<compile_context>
chip_gen: v6e
topology: v6e:2x2x1
jax: 0.10.0
libtpu: 0.0.40
codegen_flags: <defaults>
</compile_context>

<pallas_src>
import functools
import math

import jax
import jax.numpy as jnp
from jax.experimental import pallas as pl
from jax.experimental.pallas import tpu as pltpu

LN_EPS = 1e-12
LANE = 128  # lane-dense padded width for the classifier-head output

CFG = dict(vocab=100, max_pos=16, hidden=32, heads=4, layers=2,
           intermediate=128, n_classes=3, dropout=0.1)


# ----------------------------- fused Pallas kernel ------------------------------

def _bert_layer_kernel(
    emb_ref, bias_ref, keep_ref,
    eln_g_ref, eln_b_ref,
    qkv_w_ref, qkv_b_ref,
    ao_w_ref, ao_b_ref,
    ln1_g_ref, ln1_b_ref,
    ff1_w_ref, ff1_b_ref,
    ff2_w_ref, ff2_b_ref,
    ln2_g_ref, ln2_b_ref,
    pool_w_ref, pool_b_ref,
    cls_w_ref, cls_b_ref,
    out_ref,
    x_ref,                       # VMEM scratch: resident (BS, H) activation slab
    *, B, S, H, NH):
  """One encoder layer per grid step; embedding LN at l==0, pooler+head at l==L-1."""
  BS = B * S
  Dh = H // NH
  scale = 1.0 / math.sqrt(Dh)
  f32, bf16 = jnp.float32, jnp.bfloat16

  def layernorm(z, g, b):
    mu = jnp.mean(z, axis=-1, keepdims=True)
    zc = z - mu
    var = jnp.mean(zc * zc, axis=-1, keepdims=True)
    return zc * jax.lax.rsqrt(var + LN_EPS) * g + b

  def gelu(y):
    c = math.sqrt(2.0 / math.pi)  # tanh-approx GELU (HF "gelu_new")
    return 0.5 * y * (1.0 + jnp.tanh(c * (y + 0.044715 * y * y * y)))

  l = pl.program_id(0)

  # --- first grid step: embedding LayerNorm seeds the resident activation slab ---
  @pl.when(l == 0)
  def _():
    x_ref[...] = layernorm(emb_ref[...], eln_g_ref[...], eln_b_ref[...])

  x = x_ref[...]                                                     # (BS, H) f32

  # --- self-attention, head-batched over a single (NH*B) einsum batch dim ---
  qkv = jnp.dot(x.astype(bf16), qkv_w_ref[...],
                preferred_element_type=f32) + qkv_b_ref[...]         # (BS, 3H) f32

  def heads(off):
    # (BS, 3H) lane block at `off` -> (NH*B, S, Dh); batch index = h*B + b (leading-dim ops only).
    return jnp.concatenate(
        [qkv[:, off + h * Dh: off + (h + 1) * Dh].reshape(B, S, Dh) for h in range(NH)],
        axis=0)

  qh, kh, vh = heads(0), heads(H), heads(2 * H)

  s = jnp.einsum('bqd,bkd->bqk', qh.astype(bf16), kh.astype(bf16),
                 preferred_element_type=f32) * scale + bias_ref[...]  # (NH*B, S, S) f32
  s = s - jnp.max(s, axis=-1, keepdims=True)
  p = jnp.exp(s)
  p = p * pl.reciprocal(jnp.sum(p, axis=-1, keepdims=True), approx=True)
  ctx = jnp.einsum('bqk,bkd->bqd', p.astype(bf16), vh.astype(bf16),
                   preferred_element_type=f32)                        # (NH*B, S, Dh)

  # heads back to lanes (single concat), then ONE output projection matmul
  ctx_slab = jnp.concatenate(
      [ctx[h * B:(h + 1) * B].reshape(BS, Dh) for h in range(NH)], axis=-1)   # (BS, H)
  attn = jnp.dot(ctx_slab.astype(bf16), ao_w_ref[...],
                 preferred_element_type=f32) + ao_b_ref[...]

  # add & LayerNorm fused as matmul epilogue
  x = layernorm(attn + x, ln1_g_ref[...], ln1_b_ref[...])

  # --- feed-forward ---
  ff = gelu(jnp.dot(x.astype(bf16), ff1_w_ref[...],
                    preferred_element_type=f32) + ff1_b_ref[...])
  ff = jnp.dot(ff.astype(bf16), ff2_w_ref[...],
               preferred_element_type=f32) + ff2_b_ref[...]
  x = layernorm(ff + x, ln2_g_ref[...], ln2_b_ref[...])
  x_ref[...] = x

  # --- last grid step: pooler (CLS rows) + dropout + classifier head ---
  @pl.when(l == pl.num_programs(0) - 1)
  def _():
    cls = x.reshape(B, S, H)[:, 0, :]                                 # CLS rows, no one-hot matmul
    pooled = jnp.tanh(jnp.dot(cls.astype(bf16), pool_w_ref[...],
                              preferred_element_type=f32) + pool_b_ref[...])
    dropped = pooled * keep_ref[...]                                  # inverted dropout
    out_ref[...] = jnp.dot(dropped.astype(bf16), cls_w_ref[...],
                           preferred_element_type=f32) + cls_b_ref[...]


# ----------------------------- parameters / packing -------------------------

def init_params(key, cfg):
  H, I = cfg["hidden"], cfg["intermediate"]
  V, P, C = cfg["vocab"], cfg["max_pos"], cfg["n_classes"]
  keys = iter(jax.random.split(key, 64))

  def w(shape):
    return (0.02 * jax.random.normal(next(keys), shape)).astype(jnp.float32)

  zeros = lambda s: jnp.zeros(s, jnp.float32)
  ones = lambda s: jnp.ones(s, jnp.float32)

  params = dict(
      word_emb=w((V, H)), pos_emb=w((P, H)), type_emb=w((2, H)),
      emb_ln_g=ones((H,)), emb_ln_b=zeros((H,)),
      pooler_w=w((H, H)), pooler_b=zeros((H,)),
      cls_w=w((H, C)), cls_b=zeros((C,)),
      layers=[],
  )
  for _ in range(cfg["layers"]):
    params["layers"].append(dict(
        q_w=w((H, H)), q_b=zeros((H,)),
        k_w=w((H, H)), k_b=zeros((H,)),
        v_w=w((H, H)), v_b=zeros((H,)),
        ao_w=w((H, H)), ao_b=zeros((H,)),
        ln1_g=ones((H,)), ln1_b=zeros((H,)),
        ff1_w=w((H, I)), ff1_b=zeros((I,)),
        ff2_w=w((I, H)), ff2_b=zeros((H,)),
        ln2_g=ones((H,)), ln2_b=zeros((H,)),
    ))
  return params


def prepare_params(params, cfg):
  """One-time packing hoisted out of the jitted forward: stack per-layer weights along a leading
  L axis (streamed by the kernel's layer grid) and cast matmul operands to bf16."""
  H, C = cfg["hidden"], cfg["n_classes"]
  Ls = params["layers"]
  bf16, f32 = jnp.bfloat16, jnp.float32
  stack = lambda k, dt: jnp.stack([l[k] for l in Ls]).astype(dt)            # (L, A, B)
  stack_b = lambda k: jnp.stack([l[k][None, :] for l in Ls]).astype(f32)    # (L, 1, B)

  return dict(
      word_emb=params["word_emb"], pos_emb=params["pos_emb"], type_emb=params["type_emb"],
      eln_g=params["emb_ln_g"].reshape(1, H), eln_b=params["emb_ln_b"].reshape(1, H),
      qkv_w=jnp.stack([jnp.concatenate([l["q_w"], l["k_w"], l["v_w"]], axis=1)
                       for l in Ls]).astype(bf16),                           # (L, H, 3H)
      qkv_b=jnp.stack([jnp.concatenate([l["q_b"], l["k_b"], l["v_b"]])[None, :]
                       for l in Ls]).astype(f32),                            # (L, 1, 3H)
      ao_w=stack("ao_w", bf16), ao_b=stack_b("ao_b"),
      ln1_g=stack_b("ln1_g"), ln1_b=stack_b("ln1_b"),
      ff1_w=stack("ff1_w", bf16), ff1_b=stack_b("ff1_b"),
      ff2_w=stack("ff2_w", bf16), ff2_b=stack_b("ff2_b"),
      ln2_g=stack_b("ln2_g"), ln2_b=stack_b("ln2_b"),
      pool_w=params["pooler_w"].astype(bf16), pool_b=params["pooler_b"].reshape(1, H),
      # lane-dense classifier head: pad (H, C) -> (H, 128)
      cls_w=jnp.zeros((H, LANE), bf16).at[:, :C].set(params["cls_w"].astype(bf16)),
      cls_b=jnp.zeros((1, LANE), jnp.float32).at[0, :C].set(params["cls_b"]),
  )


# ----------------------------- forward --------------------------------------

def sentiment_classifier_forward(prep, input_ids, attention_mask, dropout_key, cfg):
  B, S = input_ids.shape
  H, NH, L, C = cfg["hidden"], cfg["heads"], cfg["layers"], cfg["n_classes"]
  rate = float(cfg["dropout"])

  # --- embeddings (gather is XLA glue; everything downstream is one fused Pallas kernel) ---
  # TODO(synk): embedding-table gather stays outside the kernel (no clean whole-array Pallas
  # equivalent without manual DMA gather at this toy scale).
  emb = (jnp.take(prep["word_emb"], input_ids, axis=0)
         + prep["pos_emb"][:S][None, :, :]
         + prep["type_emb"][0][None, None, :]).reshape(B * S, H).astype(jnp.float32)

  # HF-style additive mask, pre-broadcast to the (NH*B) einsum batch (never re-broadcast in-kernel).
  mask_bias = ((1.0 - attention_mask.astype(jnp.float32)) * -1e4).reshape(B, 1, S)
  bias = jnp.tile(mask_bias, (NH, 1, 1))                              # (NH*B, 1, S), idx = h*B + b

  # Dropout keep mask (PyTorch training-mode inverted dropout), generated with jax.random so the
  # kernel stays free of TPU-only PRNG primitives.
  if rate > 0.0:
    keep = jax.random.bernoulli(dropout_key, 1.0 - rate, (B, H)).astype(jnp.float32)
    keep = keep * (1.0 / (1.0 - rate))
  else:
    keep = jnp.ones((B, H), jnp.float32)

  inputs = (
      emb, bias, keep, prep["eln_g"], prep["eln_b"],
      prep["qkv_w"], prep["qkv_b"], prep["ao_w"], prep["ao_b"],
      prep["ln1_g"], prep["ln1_b"], prep["ff1_w"], prep["ff1_b"],
      prep["ff2_w"], prep["ff2_b"], prep["ln2_g"], prep["ln2_b"],
      prep["pool_w"], prep["pool_b"], prep["cls_w"], prep["cls_b"],
  )

  def const_spec(a):   # fetched once (constant block index across the layer grid)
    if a.ndim == 2:
      return pl.BlockSpec(a.shape, lambda l: (0, 0))
    return pl.BlockSpec(a.shape, lambda l: (0, 0, 0))

  def layer_spec(a):   # streamed per-layer block, double-buffered behind compute
    return pl.BlockSpec((None,) + a.shape[1:], lambda l: (l, 0, 0))

  in_specs = (
      [const_spec(emb), const_spec(bias), const_spec(keep),
       const_spec(prep["eln_g"]), const_spec(prep["eln_b"])]
      + [layer_spec(prep[k]) for k in ("qkv_w", "qkv_b", "ao_w", "ao_b",
                                       "ln1_g", "ln1_b", "ff1_w", "ff1_b",
                                       "ff2_w", "ff2_b", "ln2_g", "ln2_b")]
      + [const_spec(prep[k]) for k in ("pool_w", "pool_b", "cls_w", "cls_b")]
  )

  grid_spec = pltpu.PrefetchScalarGridSpec(
      num_scalar_prefetch=0,
      grid=(L,),
      in_specs=in_specs,
      out_specs=pl.BlockSpec((B, LANE), lambda l: (0, 0)),
      scratch_shapes=[pltpu.VMEM((B * S, H), jnp.float32)],
  )

  kernel = functools.partial(_bert_layer_kernel, B=B, S=S, H=H, NH=NH)
  logits_pad = pl.pallas_call(
      kernel,
      out_shape=jax.ShapeDtypeStruct((B, LANE), jnp.float32),
      grid_spec=grid_spec,
      compiler_params=pltpu.CompilerParams(dimension_semantics=("arbitrary",)),
  )(*inputs)

  return logits_pad[:, :C]


if __name__ == "__main__":
  key = jax.random.PRNGKey(0)
  pkey, ikey, dkey = jax.random.split(key, 3)
  params = init_params(pkey, CFG)
  prep = prepare_params(params, CFG)   # one-time weight stacking, hoisted out of the step path

  B, S = 2, 8
  input_ids = jax.random.randint(ikey, (B, S), 0, CFG["vocab"], dtype=jnp.int32)
  attention_mask = jnp.array([[1, 1, 1, 1, 1, 1, 1, 1],
                              [1, 1, 1, 1, 1, 1, 0, 0]], dtype=jnp.int32)

  fwd = jax.jit(functools.partial(sentiment_classifier_forward, cfg=CFG))
  logits = fwd(prep, input_ids, attention_mask, dkey)
  logits = jax.block_until_ready(logits)

  assert logits.shape == (B, CFG["n_classes"]) and logits.dtype == jnp.float32
  assert bool(jnp.all(jnp.isfinite(logits)))
  print("KERNEL_OK")
</pallas_src>

<mosaic_0001>
module attributes {stable_mosaic.version = 11 : i64} {
  func.func @_bert_layer_kernel(%arg0: i32, %arg1: memref<16x32xf32, #tpu.memory_space<vmem>>, %arg2: memref<8x1x8xf32, #tpu.memory_space<vmem>>, %arg3: memref<2x32xf32, #tpu.memory_space<vmem>>, %arg4: memref<1x32xf32, #tpu.memory_space<vmem>>, %arg5: memref<1x32xf32, #tpu.memory_space<vmem>>, %arg6: memref<1x32x96xbf16, #tpu.memory_space<vmem>>, %arg7: memref<1x1x96xf32, #tpu.memory_space<vmem>>, %arg8: memref<1x32x32xbf16, #tpu.memory_space<vmem>>, %arg9: memref<1x1x32xf32, #tpu.memory_space<vmem>>, %arg10: memref<1x1x32xf32, #tpu.memory_space<vmem>>, %arg11: memref<1x1x32xf32, #tpu.memory_space<vmem>>, %arg12: memref<1x32x128xbf16, #tpu.memory_space<vmem>>, %arg13: memref<1x1x128xf32, #tpu.memory_space<vmem>>, %arg14: memref<1x128x32xbf16, #tpu.memory_space<vmem>>, %arg15: memref<1x1x32xf32, #tpu.memory_space<vmem>>, %arg16: memref<1x1x32xf32, #tpu.memory_space<vmem>>, %arg17: memref<1x1x32xf32, #tpu.memory_space<vmem>>, %arg18: memref<32x32xbf16, #tpu.memory_space<vmem>>, %arg19: memref<1x32xf32, #tpu.memory_space<vmem>>, %arg20: memref<32x128xbf16, #tpu.memory_space<vmem>>, %arg21: memref<1x128xf32, #tpu.memory_space<vmem>>, %arg22: memref<2x128xf32, #tpu.memory_space<vmem>>, %arg23: memref<16x32xf32, #tpu.memory_space<vmem>>) attributes {dimension_semantics = [#tpu.dimension_semantics<arbitrary>], iteration_bounds = array<i64: 2>, scalar_prefetch = 0 : i64, scratch_operands = 1 : i64, tpu.core_type = #tpu.core_type<tc>, window_params = [{pipeline_mode = #tpu.pipeline_mode<synchronous>, transform_indices = @transform_0, window_bounds = array<i64: 16, 32>}, {pipeline_mode = #tpu.pipeline_mode<synchronous>, transform_indices = @transform_1, window_bounds = array<i64: 8, 1, 8>}, {pipeline_mode = #tpu.pipeline_mode<synchronous>, transform_indices = @transform_2, window_bounds = array<i64: 2, 32>}, {pipeline_mode = #tpu.pipeline_mode<synchronous>, transform_indices = @transform_3, window_bounds = array<i64: 1, 32>}, {pipeline_mode = #tpu.pipeline_mode<synchronous>, transform_indices = @transform_4, window_bounds = array<i64: 1, 32>}, {transform_indices = @transform_5, window_bounds = array<i64: 1, 32, 96>}, {transform_indices = @transform_6, window_bounds = array<i64: 1, 1, 96>}, {transform_indices = @transform_7, window_bounds = array<i64: 1, 32, 32>}, {transform_indices = @transform_8, window_bounds = array<i64: 1, 1, 32>}, {transform_indices = @transform_9, window_bounds = array<i64: 1, 1, 32>}, {transform_indices = @transform_10, window_bounds = array<i64: 1, 1, 32>}, {transform_indices = @transform_11, window_bounds = array<i64: 1, 32, 128>}, {transform_indices = @transform_12, window_bounds = array<i64: 1, 1, 128>}, {transform_indices = @transform_13, window_bounds = array<i64: 1, 128, 32>}, {transform_indices = @transform_14, window_bounds = array<i64: 1, 1, 32>}, {transform_indices = @transform_15, window_bounds = array<i64: 1, 1, 32>}, {transform_indices = @transform_16, window_bounds = array<i64: 1, 1, 32>}, {pipeline_mode = #tpu.pipeline_mode<synchronous>, transform_indices = @transform_17, window_bounds = array<i64: 32, 32>}, {pipeline_mode = #tpu.pipeline_mode<synchronous>, transform_indices = @transform_18, window_bounds = array<i64: 1, 32>}, {pipeline_mode = #tpu.pipeline_mode<synchronous>, transform_indices = @transform_19, window_bounds = array<i64: 32, 128>}, {pipeline_mode = #tpu.pipeline_mode<synchronous>, transform_indices = @transform_20, window_bounds = array<i64: 1, 128>}, {pipeline_mode = #tpu.pipeline_mode<synchronous>, transform_indices = @transform_21, window_bounds = array<i64: 2, 128>}]} {
    %c0_i32 = arith.constant 0 : i32
    %0 = arith.cmpi eq, %arg0, %c0_i32 : i32
    %1 = arith.extui %0 : i1 to i32
    %c0_i32_0 = arith.constant 0 : i32
    %2 = arith.cmpi ne, %1, %c0_i32_0 : i32
    scf.if %2 {
      %c0_66 = arith.constant 0 : index
      %c0_67 = arith.constant 0 : index
      %160 = vector.load %arg1[%c0_66, %c0_67] : memref<16x32xf32, #tpu.memory_space<vmem>>, vector<16x32xf32>
      %c0_68 = arith.constant 0 : index
      %c0_69 = arith.constant 0 : index
      %161 = vector.load %arg4[%c0_68, %c0_69] : memref<1x32xf32, #tpu.memory_space<vmem>>, vector<1x32xf32>
      %c0_70 = arith.constant 0 : index
      %c0_71 = arith.constant 0 : index
      %162 = vector.load %arg5[%c0_70, %c0_71] : memref<1x32xf32, #tpu.memory_space<vmem>>, vector<1x32xf32>
      %cst_72 = arith.constant dense<0.000000e+00> : vector<16xf32>
      %163 = vector.multi_reduction <add>, %160, %cst_72 [1] : vector<16x32xf32> to vector<16xf32>
      %164 = vector.shape_cast %163 : vector<16xf32> to vector<16x1xf32>
      %cst_73 = arith.constant 3.200000e+01 : f32
      %165 = vector.broadcast %cst_73 : f32 to vector<16x1xf32>
      %166 = arith.divf %164, %165 : vector<16x1xf32>
      %167 = vector.broadcast %166 : vector<16x1xf32> to vector<16x32xf32>
      %168 = arith.subf %160, %167 : vector<16x32xf32>
      %169 = arith.mulf %168, %168 : vector<16x32xf32>
      %cst_74 = arith.constant dense<0.000000e+00> : vector<16xf32>
      %170 = vector.multi_reduction <add>, %169, %cst_74 [1] : vector<16x32xf32> to vector<16xf32>
      %171 = vector.shape_cast %170 : vector<16xf32> to vector<16x1xf32>
      %cst_75 = arith.constant 3.200000e+01 : f32
      %172 = vector.broadcast %cst_75 : f32 to vector<16x1xf32>
      %173 = arith.divf %171, %172 : vector<16x1xf32>
      %cst_76 = arith.constant 9.99999996E-13 : f32
      %174 = vector.broadcast %cst_76 : f32 to vector<16x1xf32>
      %175 = arith.addf %173, %174 : vector<16x1xf32>
      %176 = math.rsqrt %175 : vector<16x1xf32>
      %177 = vector.broadcast %176 : vector<16x1xf32> to vector<16x32xf32>
      %178 = arith.mulf %168, %177 : vector<16x32xf32>
      %179 = vector.broadcast %161 : vector<1x32xf32> to vector<16x32xf32>
      %180 = arith.mulf %178, %179 : vector<16x32xf32>
      %181 = vector.broadcast %162 : vector<1x32xf32> to vector<16x32xf32>
      %182 = arith.addf %180, %181 : vector<16x32xf32>
      %c0_77 = arith.constant 0 : index
      %c0_78 = arith.constant 0 : index
      %183 = vector.load %arg23[%c0_77, %c0_78] : memref<16x32xf32, #tpu.memory_space<vmem>>, vector<16x32xf32>
      tpu.vector_store %arg23[%c0_77, %c0_78], %182 {strides = array<i32>} : memref<16x32xf32, #tpu.memory_space<vmem>>, vector<16x32xf32>,
    } else {
    }
    %c0 = arith.constant 0 : index
    %c0_1 = arith.constant 0 : index
    %3 = vector.load %arg23[%c0, %c0_1] : memref<16x32xf32, #tpu.memory_space<vmem>>, vector<16x32xf32>
    %4 = arith.truncf %3 : vector<16x32xf32> to vector<16x32xbf16>
    %c0_2 = arith.constant 0 : index
    %c0_3 = arith.constant 0 : index
    %c0_4 = arith.constant 0 : index
    %5 = vector.load %arg6[%c0_2, %c0_3, %c0_4] : memref<1x32x96xbf16, #tpu.memory_space<vmem>>, vector<1x32x96xbf16>
    %6 = vector.shape_cast %5 : vector<1x32x96xbf16> to vector<32x96xbf16>
    %cst = arith.constant dense<0.000000e+00> : vector<16x96xf32>
    %7 = tpu.matmul %4, %6, %cst {dimension_numbers = #tpu.dot_dimension_numbers<[1], [0], [0], [1], [0, 0, 1, 1], [], []>} : vector<16x32xbf16>, vector<32x96xbf16>, vector<16x96xf32> -> vector<16x96xf32>
    %c0_5 = arith.constant 0 : index
    %c0_6 = arith.constant 0 : index
    %c0_7 = arith.constant 0 : index
    %8 = vector.load %arg7[%c0_5, %c0_6, %c0_7] : memref<1x1x96xf32, #tpu.memory_space<vmem>>, vector<1x1x96xf32>
    %9 = vector.shape_cast %8 : vector<1x1x96xf32> to vector<1x96xf32>
    %10 = vector.broadcast %9 : vector<1x96xf32> to vector<16x96xf32>
    %11 = arith.addf %7, %10 : vector<16x96xf32>
    %12 = vector.extract_strided_slice %11 {offsets = [0, 0], sizes = [16, 8], strides = [1, 1]} : vector<16x96xf32> to vector<16x8xf32>
    %13 = vector.shape_cast %12 : vector<16x8xf32> to vector<2x8x8xf32>
    %14 = vector.extract_strided_slice %11 {offsets = [0, 8], sizes = [16, 8], strides = [1, 1]} : vector<16x96xf32> to vector<16x8xf32>
    %15 = vector.shape_cast %14 : vector<16x8xf32> to vector<2x8x8xf32>
    %16 = vector.extract_strided_slice %11 {offsets = [0, 16], sizes = [16, 8], strides = [1, 1]} : vector<16x96xf32> to vector<16x8xf32>
    %17 = vector.shape_cast %16 : vector<16x8xf32> to vector<2x8x8xf32>
    %18 = vector.extract_strided_slice %11 {offsets = [0, 24], sizes = [16, 8], strides = [1, 1]} : vector<16x96xf32> to vector<16x8xf32>
    %19 = vector.shape_cast %18 : vector<16x8xf32> to vector<2x8x8xf32>
    %20 = tpu.concatenate %13, %15, %17, %19 in 0 : vector<2x8x8xf32>, vector<2x8x8xf32>, vector<2x8x8xf32>, vector<2x8x8xf32> -> vector<8x8x8xf32>
    %21 = vector.extract_strided_slice %11 {offsets = [0, 32], sizes = [16, 8], strides = [1, 1]} : vector<16x96xf32> to vector<16x8xf32>
    %22 = vector.shape_cast %21 : vector<16x8xf32> to vector<2x8x8xf32>
    %23 = vector.extract_strided_slice %11 {offsets = [0, 40], sizes = [16, 8], strides = [1, 1]} : vector<16x96xf32> to vector<16x8xf32>
    %24 = vector.shape_cast %23 : vector<16x8xf32> to vector<2x8x8xf32>
    %25 = vector.extract_strided_slice %11 {offsets = [0, 48], sizes = [16, 8], strides = [1, 1]} : vector<16x96xf32> to vector<16x8xf32>
    %26 = vector.shape_cast %25 : vector<16x8xf32> to vector<2x8x8xf32>
    %27 = vector.extract_strided_slice %11 {offsets = [0, 56], sizes = [16, 8], strides = [1, 1]} : vector<16x96xf32> to vector<16x8xf32>
    %28 = vector.shape_cast %27 : vector<16x8xf32> to vector<2x8x8xf32>
    %29 = tpu.concatenate %22, %24, %26, %28 in 0 : vector<2x8x8xf32>, vector<2x8x8xf32>, vector<2x8x8xf32>, vector<2x8x8xf32> -> vector<8x8x8xf32>
    %30 = vector.extract_strided_slice %11 {offsets = [0, 64], sizes = [16, 8], strides = [1, 1]} : vector<16x96xf32> to vector<16x8xf32>
    %31 = vector.shape_cast %30 : vector<16x8xf32> to vector<2x8x8xf32>
    %32 = vector.extract_strided_slice %11 {offsets = [0, 72], sizes = [16, 8], strides = [1, 1]} : vector<16x96xf32> to vector<16x8xf32>
    %33 = vector.shape_cast %32 : vector<16x8xf32> to vector<2x8x8xf32>
    %34 = vector.extract_strided_slice %11 {offsets = [0, 80], sizes = [16, 8], strides = [1, 1]} : vector<16x96xf32> to vector<16x8xf32>
    %35 = vector.shape_cast %34 : vector<16x8xf32> to vector<2x8x8xf32>
    %36 = vector.extract_strided_slice %11 {offsets = [0, 88], sizes = [16, 8], strides = [1, 1]} : vector<16x96xf32> to vector<16x8xf32>
    %37 = vector.shape_cast %36 : vector<16x8xf32> to vector<2x8x8xf32>
    %38 = tpu.concatenate %31, %33, %35, %37 in 0 : vector<2x8x8xf32>, vector<2x8x8xf32>, vector<2x8x8xf32>, vector<2x8x8xf32> -> vector<8x8x8xf32>
    %39 = arith.truncf %20 : vector<8x8x8xf32> to vector<8x8x8xbf16>
    %40 = arith.truncf %29 : vector<8x8x8xf32> to vector<8x8x8xbf16>
    "tpu.trace_start"() <{level = 10 : i32, message = "bqd,bkd->bqk"}> : () -> ()
    %cst_8 = arith.constant dense<0.000000e+00> : vector<8x8x8xf32>
    %41 = tpu.matmul %39, %40, %cst_8 {dimension_numbers = #tpu.dot_dimension_numbers<[2], [2], [1], [1], [0, 0, 0, 1, 1, 1], [0], [0]>} : vector<8x8x8xbf16>, vector<8x8x8xbf16>, vector<8x8x8xf32> -> vector<8x8x8xf32>
    "tpu.trace_stop"() : () -> ()
    %cst_9 = arith.constant 0.353553385 : f32
    %42 = vector.broadcast %cst_9 : f32 to vector<8x8x8xf32>
    %43 = arith.mulf %41, %42 : vector<8x8x8xf32>
    %c0_10 = arith.constant 0 : index
    %c0_11 = arith.constant 0 : index
    %c0_12 = arith.constant 0 : index
    %44 = vector.load %arg2[%c0_10, %c0_11, %c0_12] : memref<8x1x8xf32, #tpu.memory_space<vmem>>, vector<8x1x8xf32>
    %45 = vector.broadcast %44 : vector<8x1x8xf32> to vector<8x8x8xf32>
    %46 = arith.addf %43, %45 : vector<8x8x8xf32>
    %cst_13 = arith.constant dense<0xFF800000> : vector<8x8xf32>
    %47 = vector.multi_reduction <maximumf>, %46, %cst_13 [2] : vector<8x8x8xf32> to vector<8x8xf32>
    %48 = vector.shape_cast %47 : vector<8x8xf32> to vector<8x8x1xf32>
    %49 = vector.broadcast %48 : vector<8x8x1xf32> to vector<8x8x8xf32>
    %50 = arith.subf %46, %49 : vector<8x8x8xf32>
    %51 = math.exp %50 : vector<8x8x8xf32>
    %cst_14 = arith.constant dense<0.000000e+00> : vector<8x8xf32>
    %52 = vector.multi_reduction <add>, %51, %cst_14 [2] : vector<8x8x8xf32> to vector<8x8xf32>
    %53 = vector.shape_cast %52 : vector<8x8xf32> to vector<8x8x1xf32>
    %54 = tpu.reciprocal %53 {approx = true} : vector<8x8x1xf32> -> vector<8x8x1xf32>
    %55 = vector.broadcast %54 : vector<8x8x1xf32> to vector<8x8x8xf32>
    %56 = arith.mulf %51, %55 : vector<8x8x8xf32>
    %57 = arith.truncf %56 : vector<8x8x8xf32> to vector<8x8x8xbf16>
    %58 = arith.truncf %38 : vector<8x8x8xf32> to vector<8x8x8xbf16>
    "tpu.trace_start"() <{level = 10 : i32, message = "bqk,bkd->bqd"}> : () -> ()
    %cst_15 = arith.constant dense<0.000000e+00> : vector<8x8x8xf32>
    %59 = tpu.matmul %57, %58, %cst_15 {dimension_numbers = #tpu.dot_dimension_numbers<[2], [1], [1], [2], [0, 0, 0, 1, 1, 2], [0], [0]>} : vector<8x8x8xbf16>, vector<8x8x8xbf16>, vector<8x8x8xf32> -> vector<8x8x8xf32>
    "tpu.trace_stop"() : () -> ()
    %60 = vector.extract_strided_slice %59 {offsets = [0, 0, 0], sizes = [2, 8, 8], strides = [1, 1, 1]} : vector<8x8x8xf32> to vector<2x8x8xf32>
    %61 = vector.shape_cast %60 : vector<2x8x8xf32> to vector<16x8xf32>
    %62 = vector.extract_strided_slice %59 {offsets = [2, 0, 0], sizes = [2, 8, 8], strides = [1, 1, 1]} : vector<8x8x8xf32> to vector<2x8x8xf32>
    %63 = vector.shape_cast %62 : vector<2x8x8xf32> to vector<16x8xf32>
    %64 = vector.extract_strided_slice %59 {offsets = [4, 0, 0], sizes = [2, 8, 8], strides = [1, 1, 1]} : vector<8x8x8xf32> to vector<2x8x8xf32>
    %65 = vector.shape_cast %64 : vector<2x8x8xf32> to vector<16x8xf32>
    %66 = vector.extract_strided_slice %59 {offsets = [6, 0, 0], sizes = [2, 8, 8], strides = [1, 1, 1]} : vector<8x8x8xf32> to vector<2x8x8xf32>
    %67 = vector.shape_cast %66 : vector<2x8x8xf32> to vector<16x8xf32>
    %68 = tpu.concatenate %61, %63, %65, %67 in 1 : vector<16x8xf32>, vector<16x8xf32>, vector<16x8xf32>, vector<16x8xf32> -> vector<16x32xf32>
    %69 = arith.truncf %68 : vector<16x32xf32> to vector<16x32xbf16>
    %c0_16 = arith.constant 0 : index
    %c0_17 = arith.constant 0 : index
    %c0_18 = arith.constant 0 : index
    %70 = vector.load %arg8[%c0_16, %c0_17, %c0_18] : memref<1x32x32xbf16, #tpu.memory_space<vmem>>, vector<1x32x32xbf16>
    %71 = vector.shape_cast %70 : vector<1x32x32xbf16> to vector<32x32xbf16>
    %cst_19 = arith.constant dense<0.000000e+00> : vector<16x32xf32>
    %72 = tpu.matmul %69, %71, %cst_19 {dimension_numbers = #tpu.dot_dimension_numbers<[1], [0], [0], [1], [0, 0, 1, 1], [], []>} : vector<16x32xbf16>, vector<32x32xbf16>, vector<16x32xf32> -> vector<16x32xf32>
    %c0_20 = arith.constant 0 : index
    %c0_21 = arith.constant 0 : index
    %c0_22 = arith.constant 0 : index
    %73 = vector.load %arg9[%c0_20, %c0_21, %c0_22] : memref<1x1x32xf32, #tpu.memory_space<vmem>>, vector<1x1x32xf32>
    %74 = vector.shape_cast %73 : vector<1x1x32xf32> to vector<1x32xf32>
    %75 = vector.broadcast %74 : vector<1x32xf32> to vector<16x32xf32>
    %76 = arith.addf %72, %75 : vector<16x32xf32>
    %77 = arith.addf %76, %3 : vector<16x32xf32>
    %c0_23 = arith.constant 0 : index
    %c0_24 = arith.constant 0 : index
    %c0_25 = arith.constant 0 : index
    %78 = vector.load %arg10[%c0_23, %c0_24, %c0_25] : memref<1x1x32xf32, #tpu.memory_space<vmem>>, vector<1x1x32xf32>
    %79 = vector.shape_cast %78 : vector<1x1x32xf32> to vector<1x32xf32>
    %c0_26 = arith.constant 0 : index
    %c0_27 = arith.constant 0 : index
    %c0_28 = arith.constant 0 : index
    %80 = vector.load %arg11[%c0_26, %c0_27, %c0_28] : memref<1x1x32xf32, #tpu.memory_space<vmem>>, vector<1x1x32xf32>
    %81 = vector.shape_cast %80 : vector<1x1x32xf32> to vector<1x32xf32>
    %cst_29 = arith.constant dense<0.000000e+00> : vector<16xf32>
    %82 = vector.multi_reduction <add>, %77, %cst_29 [1] : vector<16x32xf32> to vector<16xf32>
    %83 = vector.shape_cast %82 : vector<16xf32> to vector<16x1xf32>
    %cst_30 = arith.constant 3.200000e+01 : f32
    %84 = vector.broadcast %cst_30 : f32 to vector<16x1xf32>
    %85 = arith.divf %83, %84 : vector<16x1xf32>
    %86 = vector.broadcast %85 : vector<16x1xf32> to vector<16x32xf32>
    %87 = arith.subf %77, %86 : vector<16x32xf32>
    %88 = arith.mulf %87, %87 : vector<16x32xf32>
    %cst_31 = arith.constant dense<0.000000e+00> : vector<16xf32>
    %89 = vector.multi_reduction <add>, %88, %cst_31 [1] : vector<16x32xf32> to vector<16xf32>
    %90 = vector.shape_cast %89 : vector<16xf32> to vector<16x1xf32>
    %cst_32 = arith.constant 3.200000e+01 : f32
    %91 = vector.broadcast %cst_32 : f32 to vector<16x1xf32>
    %92 = arith.divf %90, %91 : vector<16x1xf32>
    %cst_33 = arith.constant 9.99999996E-13 : f32
    %93 = vector.broadcast %cst_33 : f32 to vector<16x1xf32>
    %94 = arith.addf %92, %93 : vector<16x1xf32>
    %95 = math.rsqrt %94 : vector<16x1xf32>
    %96 = vector.broadcast %95 : vector<16x1xf32> to vector<16x32xf32>
    %97 = arith.mulf %87, %96 : vector<16x32xf32>
    %98 = vector.broadcast %79 : vector<1x32xf32> to vector<16x32xf32>
    %99 = arith.mulf %97, %98 : vector<16x32xf32>
    %100 = vector.broadcast %81 : vector<1x32xf32> to vector<16x32xf32>
    %101 = arith.addf %99, %100 : vector<16x32xf32>
    %102 = arith.truncf %101 : vector<16x32xf32> to vector<16x32xbf16>
    %c0_34 = arith.constant 0 : index
    %c0_35 = arith.constant 0 : index
    %c0_36 = arith.constant 0 : index
    %103 = vector.load %arg12[%c0_34, %c0_35, %c0_36] : memref<1x32x128xbf16, #tpu.memory_space<vmem>>, vector<1x32x128xbf16>
    %104 = vector.shape_cast %103 : vector<1x32x128xbf16> to vector<32x128xbf16>
    %cst_37 = arith.constant dense<0.000000e+00> : vector<16x128xf32>
    %105 = tpu.matmul %102, %104, %cst_37 {dimension_numbers = #tpu.dot_dimension_numbers<[1], [0], [0], [1], [0, 0, 1, 1], [], []>} : vector<16x32xbf16>, vector<32x128xbf16>, vector<16x128xf32> -> vector<16x128xf32>
    %c0_38 = arith.constant 0 : index
    %c0_39 = arith.constant 0 : index
    %c0_40 = arith.constant 0 : index
    %106 = vector.load %arg13[%c0_38, %c0_39, %c0_40] : memref<1x1x128xf32, #tpu.memory_space<vmem>>, vector<1x1x128xf32>
    %107 = vector.shape_cast %106 : vector<1x1x128xf32> to vector<1x128xf32>
    %108 = vector.broadcast %107 : vector<1x128xf32> to vector<16x128xf32>
    %109 = arith.addf %105, %108 : vector<16x128xf32>
    %cst_41 = arith.constant 5.000000e-01 : f32
    %110 = vector.broadcast %cst_41 : f32 to vector<16x128xf32>
    %111 = arith.mulf %110, %109 : vector<16x128xf32>
    %cst_42 = arith.constant 4.471500e-02 : f32
    %112 = vector.broadcast %cst_42 : f32 to vector<16x128xf32>
    %113 = arith.mulf %112, %109 : vector<16x128xf32>
    %114 = arith.mulf %113, %109 : vector<16x128xf32>
    %115 = arith.mulf %114, %109 : vector<16x128xf32>
    %116 = arith.addf %109, %115 : vector<16x128xf32>
    %cst_43 = arith.constant 0.797884583 : f32
    %117 = vector.broadcast %cst_43 : f32 to vector<16x128xf32>
    %118 = arith.mulf %117, %116 : vector<16x128xf32>
    %119 = math.tanh %118 : vector<16x128xf32>
    %cst_44 = arith.constant 1.000000e+00 : f32
    %120 = vector.broadcast %cst_44 : f32 to vector<16x128xf32>
    %121 = arith.addf %120, %119 : vector<16x128xf32>
    %122 = arith.mulf %111, %121 : vector<16x128xf32>
    %123 = arith.truncf %122 : vector<16x128xf32> to vector<16x128xbf16>
    %c0_45 = arith.constant 0 : index
    %c0_46 = arith.constant 0 : index
    %c0_47 = arith.constant 0 : index
    %124 = vector.load %arg14[%c0_45, %c0_46, %c0_47] : memref<1x128x32xbf16, #tpu.memory_space<vmem>>, vector<1x128x32xbf16>
    %125 = vector.shape_cast %124 : vector<1x128x32xbf16> to vector<128x32xbf16>
    %cst_48 = arith.constant dense<0.000000e+00> : vector<16x32xf32>
    %126 = tpu.matmul %123, %125, %cst_48 {dimension_numbers = #tpu.dot_dimension_numbers<[1], [0], [0], [1], [0, 0, 1, 1], [], []>} : vector<16x128xbf16>, vector<128x32xbf16>, vector<16x32xf32> -> vector<16x32xf32>
    %c0_49 = arith.constant 0 : index
    %c0_50 = arith.constant 0 : index
    %c0_51 = arith.constant 0 : index
    %127 = vector.load %arg15[%c0_49, %c0_50, %c0_51] : memref<1x1x32xf32, #tpu.memory_space<vmem>>, vector<1x1x32xf32>
    %128 = vector.shape_cast %127 : vector<1x1x32xf32> to vector<1x32xf32>
    %129 = vector.broadcast %128 : vector<1x32xf32> to vector<16x32xf32>
    %130 = arith.addf %126, %129 : vector<16x32xf32>
    %131 = arith.addf %130, %101 : vector<16x32xf32>
    %c0_52 = arith.constant 0 : index
    %c0_53 = arith.constant 0 : index
    %c0_54 = arith.constant 0 : index
    %132 = vector.load %arg16[%c0_52, %c0_53, %c0_54] : memref<1x1x32xf32, #tpu.memory_space<vmem>>, vector<1x1x32xf32>
    %133 = vector.shape_cast %132 : vector<1x1x32xf32> to vector<1x32xf32>
    %c0_55 = arith.constant 0 : index
    %c0_56 = arith.constant 0 : index
    %c0_57 = arith.constant 0 : index
    %134 = vector.load %arg17[%c0_55, %c0_56, %c0_57] : memref<1x1x32xf32, #tpu.memory_space<vmem>>, vector<1x1x32xf32>
    %135 = vector.shape_cast %134 : vector<1x1x32xf32> to vector<1x32xf32>
    %cst_58 = arith.constant dense<0.000000e+00> : vector<16xf32>
    %136 = vector.multi_reduction <add>, %131, %cst_58 [1] : vector<16x32xf32> to vector<16xf32>
    %137 = vector.shape_cast %136 : vector<16xf32> to vector<16x1xf32>
    %cst_59 = arith.constant 3.200000e+01 : f32
    %138 = vector.broadcast %cst_59 : f32 to vector<16x1xf32>
    %139 = arith.divf %137, %138 : vector<16x1xf32>
    %140 = vector.broadcast %139 : vector<16x1xf32> to vector<16x32xf32>
    %141 = arith.subf %131, %140 : vector<16x32xf32>
    %142 = arith.mulf %141, %141 : vector<16x32xf32>
    %cst_60 = arith.constant dense<0.000000e+00> : vector<16xf32>
    %143 = vector.multi_reduction <add>, %142, %cst_60 [1] : vector<16x32xf32> to vector<16xf32>
    %144 = vector.shape_cast %143 : vector<16xf32> to vector<16x1xf32>
    %cst_61 = arith.constant 3.200000e+01 : f32
    %145 = vector.broadcast %cst_61 : f32 to vector<16x1xf32>
    %146 = arith.divf %144, %145 : vector<16x1xf32>
    %cst_62 = arith.constant 9.99999996E-13 : f32
    %147 = vector.broadcast %cst_62 : f32 to vector<16x1xf32>
    %148 = arith.addf %146, %147 : vector<16x1xf32>
    %149 = math.rsqrt %148 : vector<16x1xf32>
    %150 = vector.broadcast %149 : vector<16x1xf32> to vector<16x32xf32>
    %151 = arith.mulf %141, %150 : vector<16x32xf32>
    %152 = vector.broadcast %133 : vector<1x32xf32> to vector<16x32xf32>
    %153 = arith.mulf %151, %152 : vector<16x32xf32>
    %154 = vector.broadcast %135 : vector<1x32xf32> to vector<16x32xf32>
    %155 = arith.addf %153, %154 : vector<16x32xf32>
    %c0_63 = arith.constant 0 : index
    %c0_64 = arith.constant 0 : index
    %156 = vector.load %arg23[%c0_63, %c0_64] : memref<16x32xf32, #tpu.memory_space<vmem>>, vector<16x32xf32>
    tpu.vector_store %arg23[%c0_63, %c0_64], %155 {strides = array<i32>} : memref<16x32xf32, #tpu.memory_space<vmem>>, vector<16x32xf32>,
    %c1_i32 = arith.constant 1 : i32
    %157 = arith.cmpi eq, %arg0, %c1_i32 : i32
    %158 = arith.extui %157 : i1 to i32
    %c0_i32_65 = arith.constant 0 : i32
    %159 = arith.cmpi ne, %158, %c0_i32_65 : i32
    scf.if %159 {
      %160 = vector.shape_cast %155 : vector<16x32xf32> to vector<2x8x32xf32>
      %161 = vector.extract_strided_slice %160 {offsets = [0, 0, 0], sizes = [2, 1, 32], strides = [1, 1, 1]} : vector<2x8x32xf32> to vector<2x1x32xf32>
      %162 = vector.shape_cast %161 : vector<2x1x32xf32> to vector<2x32xf32>
      %163 = arith.truncf %162 : vector<2x32xf32> to vector<2x32xbf16>
      %c0_66 = arith.constant 0 : index
      %c0_67 = arith.constant 0 : index
      %164 = vector.load %arg18[%c0_66, %c0_67] : memref<32x32xbf16, #tpu.memory_space<vmem>>, vector<32x32xbf16>
      %cst_68 = arith.constant dense<0.000000e+00> : vector<2x32xf32>
      %165 = tpu.matmul %163, %164, %cst_68 {dimension_numbers = #tpu.dot_dimension_numbers<[1], [0], [0], [1], [0, 0, 1, 1], [], []>} : vector<2x32xbf16>, vector<32x32xbf16>, vector<2x32xf32> -> vector<2x32xf32>
      %c0_69 = arith.constant 0 : index
      %c0_70 = arith.constant 0 : index
      %166 = vector.load %arg19[%c0_69, %c0_70] : memref<1x32xf32, #tpu.memory_space<vmem>>, vector<1x32xf32>
      %167 = vector.broadcast %166 : vector<1x32xf32> to vector<2x32xf32>
      %168 = arith.addf %165, %167 : vector<2x32xf32>
      %169 = math.tanh %168 : vector<2x32xf32>
      %c0_71 = arith.constant 0 : index
      %c0_72 = arith.constant 0 : index
      %170 = vector.load %arg3[%c0_71, %c0_72] : memref<2x32xf32, #tpu.memory_space<vmem>>, vector<2x32xf32>
      %171 = arith.mulf %169, %170 : vector<2x32xf32>
      %172 = arith.truncf %171 : vector<2x32xf32> to vector<2x32xbf16>
      %c0_73 = arith.constant 0 : index
      %c0_74 = arith.constant 0 : index
      %173 = vector.load %arg20[%c0_73, %c0_74] : memref<32x128xbf16, #tpu.memory_space<vmem>>, vector<32x128xbf16>
      %cst_75 = arith.constant dense<0.000000e+00> : vector<2x128xf32>
      %174 = tpu.matmul %172, %173, %cst_75 {dimension_numbers = #tpu.dot_dimension_numbers<[1], [0], [0], [1], [0, 0, 1, 1], [], []>} : vector<2x32xbf16>, vector<32x128xbf16>, vector<2x128xf32> -> vector<2x128xf32>
      %c0_76 = arith.constant 0 : index
      %c0_77 = arith.constant 0 : index
      %175 = vector.load %arg21[%c0_76, %c0_77] : memref<1x128xf32, #tpu.memory_space<vmem>>, vector<1x128xf32>
      %176 = vector.broadcast %175 : vector<1x128xf32> to vector<2x128xf32>
      %177 = arith.addf %174, %176 : vector<2x128xf32>
      %c0_78 = arith.constant 0 : index
      %c0_79 = arith.constant 0 : index
      %178 = vector.load %arg22[%c0_78, %c0_79] : memref<2x128xf32, #tpu.memory_space<vmem>>, vector<2x128xf32>
      tpu.vector_store %arg22[%c0_78, %c0_79], %177 {strides = array<i32>} : memref<2x128xf32, #tpu.memory_space<vmem>>, vector<2x128xf32>,
    } else {
    }
    return
  }
  func.func @transform_0(%arg0: i32) -> (i32, i32) {
    %c0_i32 = arith.constant 0 : i32
    %c0_i32_0 = arith.constant 0 : i32
    %c0_i32_1 = arith.constant 0 : i32
    return %c0_i32, %c0_i32_0 : i32, i32
  }
  func.func @transform_1(%arg0: i32) -> (i32, i32, i32) {
    %c0_i32 = arith.constant 0 : i32
    %c0_i32_0 = arith.constant 0 : i32
    %c0_i32_1 = arith.constant 0 : i32
    %c0_i32_2 = arith.constant 0 : i32
    return %c0_i32, %c0_i32_0, %c0_i32_1 : i32, i32, i32
  }
  func.func @transform_2(%arg0: i32) -> (i32, i32) {
    %c0_i32 = arith.constant 0 : i32
    %c0_i32_0 = arith.constant 0 : i32
    %c0_i32_1 = arith.constant 0 : i32
    return %c0_i32, %c0_i32_0 : i32, i32
  }
  func.func @transform_3(%arg0: i32) -> (i32, i32) {
    %c0_i32 = arith.constant 0 : i32
    %c0_i32_0 = arith.constant 0 : i32
    %c0_i32_1 = arith.constant 0 : i32
    return %c0_i32, %c0_i32_0 : i32, i32
  }
  func.func @transform_4(%arg0: i32) -> (i32, i32) {
    %c0_i32 = arith.constant 0 : i32
    %c0_i32_0 = arith.constant 0 : i32
    %c0_i32_1 = arith.constant 0 : i32
    return %c0_i32, %c0_i32_0 : i32, i32
  }
  func.func @transform_5(%arg0: i32) -> (i32, i32, i32) {
    %c0_i32 = arith.constant 0 : i32
    %c0_i32_0 = arith.constant 0 : i32
    %c0_i32_1 = arith.constant 0 : i32
    return %arg0, %c0_i32, %c0_i32_0 : i32, i32, i32
  }
  func.func @transform_6(%arg0: i32) -> (i32, i32, i32) {
    %c0_i32 = arith.constant 0 : i32
    %c0_i32_0 = arith.constant 0 : i32
    %c0_i32_1 = arith.constant 0 : i32
    return %arg0, %c0_i32, %c0_i32_0 : i32, i32, i32
  }
  func.func @transform_7(%arg0: i32) -> (i32, i32, i32) {
    %c0_i32 = arith.constant 0 : i32
    %c0_i32_0 = arith.constant 0 : i32
    %c0_i32_1 = arith.constant 0 : i32
    return %arg0, %c0_i32, %c0_i32_0 : i32, i32, i32
  }
  func.func @transform_8(%arg0: i32) -> (i32, i32, i32) {
    %c0_i32 = arith.constant 0 : i32
    %c0_i32_0 = arith.constant 0 : i32
    %c0_i32_1 = arith.constant 0 : i32
    return %arg0, %c0_i32, %c0_i32_0 : i32, i32, i32
  }
  func.func @transform_9(%arg0: i32) -> (i32, i32, i32) {
    %c0_i32 = arith.constant 0 : i32
    %c0_i32_0 = arith.constant 0 : i32
    %c0_i32_1 = arith.constant 0 : i32
    return %arg0, %c0_i32, %c0_i32_0 : i32, i32, i32
  }
  func.func @transform_10(%arg0: i32) -> (i32, i32, i32) {
    %c0_i32 = arith.constant 0 : i32
    %c0_i32_0 = arith.constant 0 : i32
    %c0_i32_1 = arith.constant 0 : i32
    return %arg0, %c0_i32, %c0_i32_0 : i32, i32, i32
  }
  func.func @transform_11(%arg0: i32) -> (i32, i32, i32) {
    %c0_i32 = arith.constant 0 : i32
    %c0_i32_0 = arith.constant 0 : i32
    %c0_i32_1 = arith.constant 0 : i32
    return %arg0, %c0_i32, %c0_i32_0 : i32, i32, i32
  }
  func.func @transform_12(%arg0: i32) -> (i32, i32, i32) {
    %c0_i32 = arith.constant 0 : i32
    %c0_i32_0 = arith.constant 0 : i32
    %c0_i32_1 = arith.constant 0 : i32
    return %arg0, %c0_i32, %c0_i32_0 : i32, i32, i32
  }
  func.func @transform_13(%arg0: i32) -> (i32, i32, i32) {
    %c0_i32 = arith.constant 0 : i32
    %c0_i32_0 = arith.constant 0 : i32
    %c0_i32_1 = arith.constant 0 : i32
    return %arg0, %c0_i32, %c0_i32_0 : i32, i32, i32
  }
  func.func @transform_14(%arg0: i32) -> (i32, i32, i32) {
    %c0_i32 = arith.constant 0 : i32
    %c0_i32_0 = arith.constant 0 : i32
    %c0_i32_1 = arith.constant 0 : i32
    return %arg0, %c0_i32, %c0_i32_0 : i32, i32, i32
  }
  func.func @transform_15(%arg0: i32) -> (i32, i32, i32) {
    %c0_i32 = arith.constant 0 : i32
    %c0_i32_0 = arith.constant 0 : i32
    %c0_i32_1 = arith.constant 0 : i32
    return %arg0, %c0_i32, %c0_i32_0 : i32, i32, i32
  }
  func.func @transform_16(%arg0: i32) -> (i32, i32, i32) {
    %c0_i32 = arith.constant 0 : i32
    %c0_i32_0 = arith.constant 0 : i32
    %c0_i32_1 = arith.constant 0 : i32
    return %arg0, %c0_i32, %c0_i32_0 : i32, i32, i32
  }
  func.func @transform_17(%arg0: i32) -> (i32, i32) {
    %c0_i32 = arith.constant 0 : i32
    %c0_i32_0 = arith.constant 0 : i32
    %c0_i32_1 = arith.constant 0 : i32
    return %c0_i32, %c0_i32_0 : i32, i32
  }
  func.func @transform_18(%arg0: i32) -> (i32, i32) {
    %c0_i32 = arith.constant 0 : i32
    %c0_i32_0 = arith.constant 0 : i32
    %c0_i32_1 = arith.constant 0 : i32
    return %c0_i32, %c0_i32_0 : i32, i32
  }
  func.func @transform_19(%arg0: i32) -> (i32, i32) {
    %c0_i32 = arith.constant 0 : i32
    %c0_i32_0 = arith.constant 0 : i32
    %c0_i32_1 = arith.constant 0 : i32
    return %c0_i32, %c0_i32_0 : i32, i32
  }
  func.func @transform_20(%arg0: i32) -> (i32, i32) {
    %c0_i32 = arith.constant 0 : i32
    %c0_i32_0 = arith.constant 0 : i32
    %c0_i32_1 = arith.constant 0 : i32
    return %c0_i32, %c0_i32_0 : i32, i32
  }
  func.func @transform_21(%arg0: i32) -> (i32, i32) {
    %c0_i32 = arith.constant 0 : i32
    %c0_i32_0 = arith.constant 0 : i32
    %c0_i32_1 = arith.constant 0 : i32
    return %c0_i32, %c0_i32_0 : i32, i32
  }
}

</mosaic_0001>

<bundles_post_ra>
// kernel: sentiment_classifier_forward.1
= control target key start
LH: loop header
LB: loop body
LE: loop exit
PB: predicated region body
PF: predicated region fallthrough
CT: control target
= control target key end

     0   :  { %s3626_s0 = inlined_call_operand.vmem [shape: f32[16,32], index: 0, kind: input, shape index: {}]   ;;  %s3627_s1 = inlined_call_operand.vmem [shape: f32[8,1,8], index: 1, kind: input, shape index: {}]   ;;  %s3628_s2 = inlined_call_operand.vmem [shape: f32[2,32], index: 2, kind: input, shape index: {}]   ;;  %s3629_s3 = inlined_call_operand.vmem [shape: f32[1,32], index: 3, kind: input, shape index: {}]   ;;  %s3630_s4 = inlined_call_operand.vmem [shape: f32[1,32], index: 4, kind: input, shape index: {}]   ;;  %s3631_s5 = inlined_call_operand.vmem [shape: bf16[2,32,96], index: 5, kind: input, shape index: {}]   ;;  %s3632_s6 = inlined_call_operand.vmem [shape: f32[2,1,96], index: 6, kind: input, shape index: {}]   ;;  %s3633_s7 = inlined_call_operand.vmem [shape: bf16[2,32,32], index: 7, kind: input, shape index: {}]   ;;  %s3634_s8 = inlined_call_operand.vmem [shape: f32[2,1,32], index: 8, kind: input, shape index: {}]   ;;  %s3635_s9 = inlined_call_operand.vmem [shape: f32[2,1,32], index: 9, kind: input, shape index: {}]   ;;  %s3636_s10 = inlined_call_operand.vmem [shape: f32[2,1,32], index: 10, kind: input, shape index: {}]   ;;  %s3637_s11 = inlined_call_operand.vmem [shape: bf16[2,32,128], index: 11, kind: input, shape index: {}]   ;;  %s3638_s12 = inlined_call_operand.vmem [shape: f32[2,1,128], index: 12, kind: input, shape index: {}]   ;;  %s3639_s13 = inlined_call_operand.vmem [shape: bf16[2,128,32], index: 13, kind: input, shape index: {}]   ;;  %s3640_s14 = inlined_call_operand.vmem [shape: f32[2,1,32], index: 14, kind: input, shape index: {}]   ;;  %s3641_s15 = inlined_call_operand.vmem [shape: f32[2,1,32], index: 15, kind: input, shape index: {}]   ;;  %s3642_s16 = inlined_call_operand.vmem [shape: f32[2,1,32], index: 16, kind: input, shape index: {}]   ;;  %s3643_s17 = inlined_call_operand.vmem [shape: bf16[32,32], index: 17, kind: input, shape index: {}]   ;;  %s3644_s18 = inlined_call_operand.vmem [shape: f32[1,32], index: 18, kind: input, shape index: {}]   ;;  %s3645_s19 = inlined_call_operand.vmem [shape: bf16[32,128], index: 19, kind: input, shape index: {}]   ;;  %s3646_s20 = inlined_call_operand.vmem [shape: f32[1,128], index: 20, kind: input, shape index: {}]   ;;  %s3647_s21 = inlined_call_operand.hbm [shape: f32[2,128], index: 21, kind: output, shape index: {}]  }
   0x1   :  { %3653 = sst [smem:[#allocation7_spill]] %s3626_s0 }
   0x2   :  { %3654 = sst [smem:[#allocation8_spill]] %s3627_s1 }
   0x3   :  { %3655 = sst [smem:[#allocation9_spill]] %s3628_s2 }
   0x4   :  { %3656 = sst [smem:[#allocation10_spill]] %s3629_s3 }
   0x5   :  { %3657 = sst [smem:[#allocation11_spill]] %s3630_s4 }
   0x6   :  { %3658 = sst [smem:[#allocation12_spill]] %s3631_s5 }
   0x7   :  { %3659 = sst [smem:[#allocation13_spill]] %s3633_s7 }
   0x8   :  { %3660 = sst [smem:[#allocation14_spill]] %s3643_s17 }
   0x9   :  { %3661 = sst [smem:[#allocation15_spill]] %s3644_s18 }
   0xa   :  { %3662 = sst [smem:[#allocation16_spill]] %s3645_s19 }
   0xb   :  { %3663 = sst [smem:[#allocation17_spill]] %s3646_s20 }
   0xc   :  { %3664 = sst [smem:[#allocation18_spill]] %s3647_s21 }
   0xd   :  { %26 = vsyncpa [#allocation4], 0  ;;  %s3191_s2 = smov 0  }
   0xe LB: > { %3665 = sst [smem:[#allocation6_spill]] %s3066_s2  ;;  %s3197_s25 = sadd.s32 4294967295, %s3066_s2   ;;  %s3066_s2 = sphi %s3191_s2, %s32_s2  }
   0xf   : > { %p2617_p0 = scmp.ge.s32.totalorder %s3066_s2, 1  ;;  %p677_p1 = scmp.lt.s32.totalorder %s3066_s2, 3 }
  0x11   : > { %p678_p2 = pnand %p2617_p0, %p677_p1 }
  0x12   : > { %p771_p3 = scmp.lt.s32.totalorder (!%p678_p2), %s3197_s25, 1  ;;  %s3666_s30 = sld [smem:[#allocation12_spill]] (!%p678_p2) }
  0x13   : > { %681 = sbr.rel (%p678_p2) target bundleno = 3380 (0xd34), region = 104  ;;  %s3667_s7 = sld [smem:[#allocation13_spill]] (!%p678_p2) }
  0x14   : > { %p2626_p4 = scmp.ne.s32.totalorder (!%p678_p2), %s3197_s25, 0 }
  0x18   : > { %s3203_s26 = scalar_select %p771_p3, %s3197_s25, 1 }
  0x19   : > { %s3668_s2 = sld [smem:[#allocation7_spill]] (!%p2626_p4) }
  0x1a   : > { %s2691_s27 = sshll.u32 %s3203_s26, 4  ;;  %s2694_s17 = sshll.u32 %s3203_s26, 6 }
  0x1b   : > { %s3213_s5 = scalar_lea.vmem %s3666_s30, %s2691_s27  ;;  %s3218_s1 = scalar_lea.vmem %s3667_s7, %s2691_s27 }
  0x1c   : > { %s3235_s30 = scalar_lea.vmem %s3637_s11, %s2691_s27  ;;  %s3245_s21 = scalar_lea.vmem %s3639_s13, %s2694_s17 }
  0x1d   : > { %s808_s3 = scalar_lea.vmem %s3640_s14, %s3203_s26  ;;  %s811_s0 = scalar_lea.vmem %s3641_s15, %s3203_s26 }
  0x1e   : > { %s814_s19 = scalar_lea.vmem %s3642_s16, %s3203_s26  ;;  %819 = sbr.rel (%p2626_p4) target bundleno = 349 (0x15d), region = 108 }
  0x1f   : > { %s3669_s24 = smov (!%p2626_p4), %s3668_s2  ;;  %s3670_s18 = sld [smem:[#allocation10_spill]] (!%p2626_p4) }
  0x20   : > { %s3671_s27 = sld [smem:[#allocation11_spill]] (!%p2626_p4) }
  0x23   : > { %v820_v0 = vld [vmem:[%s3668_s2] sm:$0xff]  ;;  %vm824_vm0 = vcmask 261120   ;;  %v821_v1 = vld [vmem:[%s3669_s24 + $0x8] sm:$0xff] }
  0x24   : > { %v825_v2 = vsel %vm824_vm0, %v820_v0, 0.0  ;;  %v828_v3 = vsel %vm824_vm0, %v821_v1, 0.0 }
  0x25   : > { %826 = vadd.xlane.f32.xlu0 %v825_v2  ;;  %v2627_v21 = vld [vmem:[%s3670_s18] ss:$0 sm:$0xff] }
  0x26   : > { %v2628_v23 = vld [vmem:[%s3671_s27] ss:$0 sm:$0xff] }
  0x29   : > { %829 = vadd.xlane.f32.xlu0 %v828_v3 }
  0xae   : > { %v827_v4 = vpop.xlane.xlu0 %826 }
  0xaf   : > { %v832_v5 = vmul.f32 0.03125, %v827_v4 }
  0xb1   : > { %v834_v6 = vsub.f32 %v820_v0, %v832_v5 }
  0xb2   : > { %v830_v7 = vpop.xlane.xlu0 %829 }
  0xb3   : > { %v833_v8 = vmul.f32 0.03125, %v830_v7  ;;  %v836_v9 = vmul.f32 %v834_v6, %v834_v6 }
  0xb5   : > { %v835_v10 = vsub.f32 %v821_v1, %v833_v8  ;;  %v838_v11 = vsel %vm824_vm0, %v836_v9, 0.0 }
  0xb6   : > { %839 = vadd.xlane.f32.xlu1 %v838_v11 }
  0xb7   : > { %v837_v12 = vmul.f32 %v835_v10, %v835_v10 }
  0xb9   : > { %v841_v13 = vsel %vm824_vm0, %v837_v12, 0.0 }
  0xba   : > { %842 = vadd.xlane.f32.xlu1 %v841_v13 }
 0x13f   : > { %v840_v14 = vpop.xlane.xlu1 %839 }
 0x140   : > { %v844_v15 = vmul.f32 0.03125, %v840_v14 }
 0x142   : > { %v846_v16 = vadd.f32 1e-12, %v844_v15 }
 0x143   : > { %v843_v17 = vpop.xlane.xlu1 %842 }
 0x144   : > { %2934 = vrsqrt.f32 %v846_v16  ;;  %v845_v18 = vmul.f32 0.03125, %v843_v17 }
 0x146   : > { %v847_v19 = vadd.f32 1e-12, %v845_v18 }
 0x148   : > { %2936 = vrsqrt.f32 %v847_v19 }
 0x151   : > { %v2935_v20 = vpop.eup %2934 }
 0x152   : > { %v850_v22 = vmul.f32 %v2935_v20, %v834_v6 }
 0x154   : > { %v858_v24 = vmul.f32 %v2627_v21, %v850_v22 }
 0x155   : > { %v2937_v25 = vpop.eup %2936 }
 0x156   : > { %v866_v26 = vadd.f32 %v2628_v23, %v858_v24  ;;  %v851_v27 = vmul.f32 %v2937_v25, %v835_v10 }
 0x158   : > { %868 = vst.msk [vmem:[#allocation2] sm:$0xff] %vm824_vm0, %v866_v26  ;;  %v859_v28 = vmul.f32 %v2627_v21, %v851_v27 }
 0x15a   : > { %v867_v29 = vadd.f32 %v2628_v23, %v859_v28 }
 0x15c   : > { %869 = vst.msk [vmem:[#allocation2 + $0x8] sm:$0xff] %vm824_vm0, %v867_v29 }
 0x15d PF: > { %v2968_v30 = vld [vmem:[%s3213_s5 + $0x8] sm:$0xff]   ;;  %v3068_v31 = vmov 0.0   ;;  %v2969_v32 = vld [vmem:[%s3213_s5] sm:$0xff]   ;;  %vm3069_vm1 = vmmov 0   ;;  %vm896_vm2 = vcmask 261120   ;;  %s3672_s22 = scalar_lea.vmem %s3632_s6, %s3203_s26  ;;  %s3070_s23 = smov 104  }
 0x15e   : > { %2751 = vmatprep.subr.bf16.mxu0 %v3068_v31  ;;  %2771 = vmatprep.subr.bf16.mxu1 %v3068_v31  ;;  %v2629_v37 = vld [vmem:[%s3672_s22] ss:$0 sm:$0xff]  ;;  %s3071_s2 = smov 120   ;;  %s3072_s17 = smov 96   ;;  %vm972_vm3 = vcmask 64512   ;;  %vm1535_vm4 = vcmask 1043456  }
 0x15f   : > { %2752 = vmatpush3.bf16.msra.mxu0 %v2968_v30  ;;  %2755 = vmatprep.mubr.msk.bf16.mxu0 %vm3069_vm1, %v3068_v31  ;;  %v3284_v33 = vld [vmem:[#allocation2] sm:$0xff]  ;;  %s3073_s7 = smov 112   ;;  %s3074_s29 = smov 64   ;;  %vm1941_vm5 = vcmask 130048   ;;  %vm1944_vm6 = vcmask 195584  }
 0x160   : > { %2753 = vmatprep.subr.bf16.mxu0 %v3068_v31  ;;  %2773 = vmatprep.mubr.msk.bf16.mxu1 %vm3069_vm1, %v3068_v31  ;;  %s3673_s28 = sld [smem:[#allocation8_spill]]  ;;  %s3676_s4 = scalar_lea.vmem %s3636_s10, %s3203_s26 }
 0x161   : > { %p2678_p5 = scmp.ne.s32.totalorder %s3197_s25, 1 }
 0x162   : > { %s3678_s20 = sld [smem:[#allocation14_spill]] (!%p2678_p5) }
 0x163   : > { %v3286_v34 = vld [vmem:[#allocation2 + $0x8] sm:$0xff]  ;;  %2754 = vmatpush3.bf16.msra.mxu0 %v2969_v32  ;;  %s3679_s5 = sld [smem:[#allocation16_spill]] (!%p2678_p5) }
 0x164   : > { %v872_v35 = vpack.c.bf16 %v3286_v34, %v3284_v33  ;;  %2759 = vmatprep.subr.bf16.mxu0 %v3068_v31 }
 0x166   : > { %2756 = vmatmul.mubr.msk.bf16.vlgmr.msra.gmra.mxu0 %vm896_vm2, %v872_v35  ;;  %v2641_v18 = vld [vmem:[%s3673_s28] ss:$0 sm:$0xff]  ;;  %v2642_v26 = vld [vmem:[%s3673_s28 + $0x1] ss:$0 sm:$0xff] }
 0x167   : > { %2761 = vmatprep.mubr.msk.bf16.mxu0 %vm3069_vm1, %v3068_v31 }
 0x226   : > { %v934_v36 = vpop.f32.mrf.mxu0 }
 0x227   : > { %v935_v40 = vadd.f32 %v2629_v37, %v934_v36 }
 0x228   : > { %v2757_v38 = vpop.f32.mrf.mxu0 }
 0x229   : > { %v961_v44 = vpack.c.bf16 %v935_v40, %v935_v40  ;;  %v2643_v38 = vld [vmem:[%s3673_s28 + $0x2] ss:$0 sm:$0xff] }
 0x22a   : > { %v937_v39 = vpop.f32.mrf.mxu0 }
 0x22b   : > { %v938_v41 = vadd.f32 %v2629_v37, %v937_v39  ;;  %v2644_v39 = vld [vmem:[%s3673_s28 + $0x3] ss:$0 sm:$0xff] }
 0x22c   : > { %v2758_v42 = vpop.f32.mrf.mxu0 }
 0x22d   : > { %v2948_v43 = vpack.i.bf16 %v938_v41, %v935_v40  ;;  %v962_v45 = vpack.c.bf16 %v938_v41, %v938_v41 }
 0x22f   : > { %2949 = vrot.lane.b32.xlu1 %v2948_v43, %s3070_s23  ;;  %2939 = vrot.lane.b32.xlu0 %v2948_v43, %s3071_s2  ;;  %s3076_s23 = smov 16   ;;  %s3077_s2 = smov 24  }
 0x233   : > { %970 = vrot.lane.b32.xlu1 %v961_v44, %s3072_s17  ;;  %2944 = vrot.lane.b32.xlu0 %v2948_v43, %s3073_s7  ;;  %s3674_s7 = scalar_lea.vmem %s3634_s8, %s3203_s26 }
 0x237   : > { %1020 = vrot.lane.b32.xlu0 %v962_v45, %s3072_s17 }
 0x2a1   : > { %v2950_v46 = vpop.permute.xlu1 %2949  ;;  %v2940_v47 = vpop.permute.xlu0 %2939 }
 0x2a2   : > { %v2942_v48 = vunpack.i.h.bf16 %v2940_v47  ;;  %v2941_v49 = vunpack.i.l.bf16 %v2940_v47  ;;  %v2951_v57 = vunpack.i.l.bf16 %v2950_v46  ;;  %v2952_v60 = vunpack.i.h.bf16 %v2950_v46 }
 0x2a4   : > { %v3304_v50 = vpack.c.bf16 %v2942_v48, %v2942_v48  ;;  %v3306_v51 = vpack.c.bf16 %v2941_v49, %v2941_v49  ;;  %v3322_v62 = vpack.c.bf16 %v2951_v57, %v2951_v57  ;;  %v3324_v63 = vpack.c.bf16 %v2952_v60, %v2952_v60  ;;  %v2646_v57 = vld [vmem:[%s3673_s28 + $0x5] ss:$0 sm:$0xff] }
 0x2a5   : > { %v971_v52 = vpop.permute.xlu1 %970  ;;  %v2945_v53 = vpop.permute.xlu0 %2944 }
 0x2a6   : > { %v977_v54 = vsel %vm972_vm3, %v971_v52, 0  ;;  %v2947_v55 = vunpack.i.h.bf16 %v2945_v53  ;;  %v2946_v56 = vunpack.i.l.bf16 %v2945_v53  ;;  %1069 = vrot.lane.b32.xlu1 %v3306_v51, %s3072_s17  ;;  %1118 = vrot.lane.b32.xlu0 %v3304_v50, %s3072_s17 }
 0x2a7   : > { %2760 = vmatpush3.bf16.xpose.msra.mxu0 %v977_v54 }
 0x2a8   : > { %v3313_v58 = vpack.c.bf16 %v2947_v55, %v2947_v55  ;;  %v3315_v59 = vpack.c.bf16 %v2946_v56, %v2946_v56  ;;  %2765 = vmatprep.subr.bf16.mxu0 %v3068_v31  ;;  %v2645_v56 = vld [vmem:[%s3673_s28 + $0x4] ss:$0 sm:$0xff] }
 0x2a9   : > { %v1021_v61 = vpop.permute.xlu0 %1020 }
 0x2aa   : > { %1167 = vrot.lane.b32.xlu1 %v3315_v59, %s3072_s17  ;;  %1216 = vrot.lane.b32.xlu0 %v3313_v58, %s3072_s17  ;;  %v1026_v0 = vsel %vm972_vm3, %v1021_v61, 0 }
 0x2ae   : > { %2762 = vmatmul.mubr.msk.bf16.vlgmr.msra.gmra.mxu0 %vm972_vm3, %v961_v44  ;;  %1265 = vrot.lane.b32.xlu1 %v3322_v62, %s3072_s17 }
 0x2af   : > { %1314 = vrot.lane.b32.xlu0 %v3324_v63, %s3072_s17  ;;  %2766 = vmatpush3.bf16.xpose.msra.mxu0 %v1026_v0 }
 0x2b0   : > { %2767 = vmatprep.mubr.msk.bf16.mxu0 %vm3069_vm1, %v3068_v31  ;;  %2777 = vmatprep.subr.bf16.mxu0 %v3068_v31 }
 0x2b2   : > { %1579 = vrot.lane.b32.xlu1 %v962_v45, %s3074_s29 }
 0x2b3   : > { %1530 = vrot.lane.b32.xlu0 %v961_v44, %s3074_s29 }
 0x2b6   : > { %2768 = vmatmul.mubr.msk.bf16.vlgmr.msra.gmra.mxu0 %vm972_vm3, %v962_v45 }
 0x2b7   : > { %2779 = vmatprep.mubr.msk.bf16.mxu0 %vm3069_vm1, %v3068_v31 }
 0x318   : > { %v1070_v1 = vpop.permute.xlu1 %1069  ;;  %v1119_v2 = vpop.permute.xlu0 %1118 }
 0x319   : > { %v1124_v3 = vsel %vm972_vm3, %v1119_v2, 0  ;;  %v1075_v4 = vsel %vm972_vm3, %v1070_v1, 0 }
 0x31a   : > { %2772 = vmatpush3.bf16.xpose.msra.mxu1 %v1075_v4  ;;  %2778 = vmatpush3.bf16.xpose.msra.mxu0 %v1124_v3 }
 0x31b   : > { %2783 = vmatprep.subr.bf16.mxu1 %v3068_v31  ;;  %2789 = vmatprep.subr.bf16.mxu0 %v3068_v31 }
 0x31c   : > { %v1168_v5 = vpop.permute.xlu1 %1167  ;;  %v1217_v6 = vpop.permute.xlu0 %1216 }
 0x31d   : > { %v1173_v7 = vsel %vm972_vm3, %v1168_v5, 0  ;;  %v1222_v8 = vsel %vm972_vm3, %v1217_v6, 0 }
 0x320   : > { %v1266_v9 = vpop.permute.xlu1 %1265 }
 0x321   : > { %2774 = vmatmul.mubr.msk.bf16.vlgmr.msra.gmra.mxu1 %vm972_vm3, %v3306_v51  ;;  %2780 = vmatmul.mubr.msk.bf16.vlgmr.msra.gmra.mxu0 %vm972_vm3, %v3304_v50  ;;  %v1315_v10 = vpop.permute.xlu0 %1314  ;;  %v1271_v11 = vsel %vm972_vm3, %v1266_v9, 0 }
 0x322   : > { %2784 = vmatpush3.bf16.xpose.msra.mxu1 %v1173_v7  ;;  %2790 = vmatpush3.bf16.xpose.msra.mxu0 %v1222_v8  ;;  %v1320_v12 = vsel %vm972_vm3, %v1315_v10, 0 }
 0x323   : > { %2785 = vmatprep.mubr.msk.bf16.mxu1 %vm3069_vm1, %v3068_v31  ;;  %2791 = vmatprep.mubr.msk.bf16.mxu0 %vm3069_vm1, %v3068_v31 }
 0x324   : > { %2795 = vmatprep.subr.bf16.mxu1 %v3068_v31  ;;  %2801 = vmatprep.subr.bf16.mxu0 %v3068_v31  ;;  %v1580_v13 = vpop.permute.xlu1 %1579 }
 0x325   : > { %v1531_v14 = vpop.permute.xlu0 %1530  ;;  %v1585_v15 = vsel %vm1535_vm4, %v1580_v13, 0  ;;  %v2648_v13 = vld [vmem:[%s3673_s28 + $0x7] ss:$0 sm:$0xff] }
 0x326   : > { %v1537_v16 = vsel %vm1535_vm4, %v1531_v14, 0 }
 0x329   : > { %2786 = vmatmul.mubr.msk.bf16.vlgmr.msra.gmra.mxu1 %vm972_vm3, %v3315_v59  ;;  %2792 = vmatmul.mubr.msk.bf16.vlgmr.msra.gmra.mxu0 %vm972_vm3, %v3313_v58 }
 0x32a   : > { %2796 = vmatpush3.bf16.xpose.msra.mxu1 %v1271_v11  ;;  %2802 = vmatpush3.bf16.xpose.msra.mxu0 %v1320_v12  ;;  %v2647_v12 = vld [vmem:[%s3673_s28 + $0x6] ss:$0 sm:$0xff] }
 0x32b   : > { %2797 = vmatprep.mubr.msk.bf16.mxu1 %vm3069_vm1, %v3068_v31  ;;  %2803 = vmatprep.mubr.msk.bf16.mxu0 %vm3069_vm1, %v3068_v31 }
 0x32c   : > { %2807 = vmatprep.subr.bf16.mxu1 %v3068_v31  ;;  %2813 = vmatprep.subr.bf16.mxu0 %v3068_v31 }
 0x331   : > { %2798 = vmatmul.mubr.msk.bf16.vlgmr.msra.gmra.mxu1 %vm972_vm3, %v3322_v62  ;;  %2804 = vmatmul.mubr.msk.bf16.vlgmr.msra.gmra.mxu0 %vm972_vm3, %v3324_v63 }
 0x332   : > { %2808 = vmatpush3.bf16.msra.mxu1 %v1537_v16  ;;  %2814 = vmatpush3.bf16.msra.mxu0 %v1585_v15 }
 0x333   : > { %2809 = vmatprep.mubr.msk.bf16.mxu1 %vm3069_vm1, %v3068_v31  ;;  %2815 = vmatprep.mubr.msk.bf16.mxu0 %vm3069_vm1, %v3068_v31 }
 0x334   : > { %2819 = vmatprep.subr.bf16.mxu1 %v3068_v31  ;;  %2825 = vmatprep.subr.bf16.mxu0 %v3068_v31 }
 0x36e   : > { %v1013_v17 = vpop.f32.mrf.mxu0 }
 0x36f   : > { %v1362_v19 = vmul.f32 0.35355338, %v1013_v17 }
 0x370   : > { %v2763_v20 = vpop.f32.mrf.mxu0 }
 0x371   : > { %v3383_v21 = vadd.f32 %v2641_v18, %v1362_v19 }
 0x372   : > { %v1016_v22 = vpop.f32.mrf.mxu0 }
 0x373   : > { %v1434_v23 = vsel %vm972_vm3, %v3383_v21, -inf }
 0x374   : > { %1435 = vmax.xlane.f32.xlu1 %v1434_v23  ;;  %v2764_v24 = vpop.f32.mrf.mxu0 }
 0x376   : > { %v1062_v25 = vpop.f32.mrf.mxu0 }
 0x377   : > { %v1363_v27 = vmul.f32 0.35355338, %v1062_v25 }
 0x378   : > { %v2769_v28 = vpop.f32.mrf.mxu0 }
 0x379   : > { %v3390_v29 = vadd.f32 %v2642_v26, %v1363_v27 }
 0x37a   : > { %v1065_v30 = vpop.f32.mrf.mxu0 }
 0x37b   : > { %v1437_v32 = vsel %vm972_vm3, %v3390_v29, -inf }
 0x37c   : > { %1438 = vmax.xlane.f32.xlu0 %v1437_v32  ;;  %v2770_v35 = vpop.f32.mrf.mxu0 }
 0x3e1   : > { %v1111_v36 = vpop.f32.mrf.mxu1  ;;  %v1160_v37 = vpop.f32.mrf.mxu0 }
 0x3e2   : > { %v1364_v40 = vmul.f32 0.35355338, %v1111_v36  ;;  %v1365_v41 = vmul.f32 0.35355338, %v1160_v37 }
 0x3e3   : > { %v2775_v42 = vpop.f32.mrf.mxu1  ;;  %v2781_v43 = vpop.f32.mrf.mxu0 }
 0x3e4   : > { %v3400_v44 = vadd.f32 %v2643_v38, %v1364_v40  ;;  %v3402_v45 = vadd.f32 %v2644_v39, %v1365_v41 }
 0x3e5   : > { %v1114_v46 = vpop.f32.mrf.mxu1  ;;  %v1163_v47 = vpop.f32.mrf.mxu0 }
 0x3e6   : > { %v1440_v48 = vsel %vm972_vm3, %v3400_v44, -inf  ;;  %v1443_v49 = vsel %vm972_vm3, %v3402_v45, -inf }
 0x3e7   : > { %v2776_v52 = vpop.f32.mrf.mxu1  ;;  %1441 = vmax.xlane.f32.xlu0 %v1440_v48  ;;  %1444 = vmax.xlane.f32.xlu1 %v1443_v49  ;;  %v2782_v53 = vpop.f32.mrf.mxu0 }
 0x3e9   : > { %v1209_v54 = vpop.f32.mrf.mxu1  ;;  %v1258_v55 = vpop.f32.mrf.mxu0 }
 0x3ea   : > { %v1366_v60 = vmul.f32 0.35355338, %v1209_v54  ;;  %v1367_v61 = vmul.f32 0.35355338, %v1258_v55 }
 0x3eb   : > { %v2787_v0 = vpop.f32.mrf.mxu1  ;;  %v2793_v1 = vpop.f32.mrf.mxu0 }
 0x3ec   : > { %v3414_v2 = vadd.f32 %v2645_v56, %v1366_v60  ;;  %v1431_v3 = vadd.f32 %v2646_v57, %v1367_v61 }
 0x3ed   : > { %v1212_v4 = vpop.f32.mrf.mxu1  ;;  %v1261_v5 = vpop.f32.mrf.mxu0 }
 0x3ee   : > { %v1446_v6 = vsel %vm972_vm3, %v3414_v2, -inf  ;;  %v1449_v7 = vsel %vm972_vm3, %v1431_v3, -inf }
 0x3ef   : > { %v2788_v8 = vpop.f32.mrf.mxu1  ;;  %1447 = vmax.xlane.f32.xlu0 %v1446_v6  ;;  %1450 = vmax.xlane.f32.xlu1 %v1449_v7  ;;  %v2794_v9 = vpop.f32.mrf.mxu0 }
 0x3f1   : > { %v1307_v10 = vpop.f32.mrf.mxu1  ;;  %v1356_v11 = vpop.f32.mrf.mxu0 }
 0x3f2   : > { %v1368_v14 = vmul.f32 0.35355338, %v1307_v10  ;;  %v1369_v15 = vmul.f32 0.35355338, %v1356_v11 }
 0x3f3   : > { %v2799_v16 = vpop.f32.mrf.mxu1  ;;  %v2805_v17 = vpop.f32.mrf.mxu0 }
 0x3f4   : > { %v3425_v18 = vadd.f32 %v2647_v12, %v1368_v14  ;;  %v1433_v19 = vadd.f32 %v2648_v13, %v1369_v15 }
 0x3f5   : > { %v1310_v20 = vpop.f32.mrf.mxu1  ;;  %v1359_v22 = vpop.f32.mrf.mxu0 }
 0x3f6   : > { %v1452_v23 = vsel %vm972_vm3, %v3425_v18, -inf  ;;  %v1455_v24 = vsel %vm972_vm3, %v1433_v19, -inf }
 0x3f7   : > { %v2800_v25 = vpop.f32.mrf.mxu1  ;;  %1453 = vmax.xlane.f32.xlu0 %v1452_v23  ;;  %1456 = vmax.xlane.f32.xlu1 %v1455_v24  ;;  %v2806_v26 = vpop.f32.mrf.mxu0 }
 0x3fd   : > { %v1436_v27 = vpop.xlane.xlu1 %1435 }
 0x3fe   : > { %v1458_v30 = vsub.f32 %v3383_v21, %v1436_v27 }
 0x400   : > { %v1466_v35 = vmul.f32 1.442695, %v1458_v30 }
 0x402   : > { %2982 = vpow2.f32 %v1466_v35 }
 0x405   : > { %v1439_v28 = vpop.xlane.xlu0 %1438 }
 0x406   : > { %v1459_v32 = vsub.f32 %v3390_v29, %v1439_v28 }
 0x408   : > { %1627 = vrot.lane.b32.xlu1 %v3306_v51, %s3074_s29  ;;  %v1468_v36 = vmul.f32 1.442695, %v1459_v32 }
 0x40a   : > { %2984 = vpow2.f32 %v1468_v36 }
 0x40d   : > { %1675 = vrot.lane.b32.xlu0 %v3304_v50, %s3074_s29 }
 0x40f   : > { %v2983_v37 = vpop.eup %2982 }
 0x410   : > { %v1482_v39 = vsel %vm972_vm3, %v2983_v37, 0.0 }
 0x417   : > { %v2985_v38 = vpop.eup %2984 }
 0x418   : > { %v1485_v40 = vsel %vm972_vm3, %v2985_v38, 0.0 }
 0x42c   : > { %1483 = vadd.xlane.f32.xlu0 %v1482_v39  ;;  %1486 = vadd.xlane.f32.xlu1 %v1485_v40 }
 0x43d   : > { %1723 = vrot.lane.b32.xlu1 %v3315_v59, %s3074_s29 }
 0x470   : > { %v1442_v50 = vpop.xlane.xlu0 %1441  ;;  %v1445_v51 = vpop.xlane.xlu1 %1444 }
 0x471   : > { %v1460_v21 = vsub.f32 %v3400_v44, %v1442_v50  ;;  %v1461_v29 = vsub.f32 %v3402_v45, %v1445_v51 }
 0x473   : > { %v1470_v41 = vmul.f32 1.442695, %v1460_v21  ;;  %v1472_v42 = vmul.f32 1.442695, %v1461_v29 }
 0x475   : > { %2986 = vpow2.f32 %v1470_v41 }
 0x476   : > { %2988 = vpow2.f32 %v1472_v42 }
 0x478   : > { %v1451_v43 = vpop.xlane.xlu1 %1450  ;;  %v1448_v60 = vpop.xlane.xlu0 %1447 }
 0x479   : > { %v1463_v46 = vsub.f32 %v1431_v3, %v1451_v43  ;;  %v1462_v61 = vsub.f32 %v3414_v2, %v1448_v60 }
 0x47b   : > { %v1476_v47 = vmul.f32 1.442695, %v1463_v46  ;;  %v1474_v1 = vmul.f32 1.442695, %v1462_v61 }
 0x47d   : > { %2990 = vpow2.f32 %v1476_v47 }
 0x480   : > { %v1457_v48 = vpop.xlane.xlu1 %1456  ;;  %v1454_v0 = vpop.xlane.xlu0 %1453 }
 0x481   : > { %v1465_v49 = vsub.f32 %v1433_v19, %v1457_v48  ;;  %v1464_v3 = vsub.f32 %v3425_v18, %v1454_v0 }
 0x482   : > { %v2987_v52 = vpop.eup %2986 }
 0x483   : > { %v2989_v53 = vpop.eup %2988  ;;  %v1480_v54 = vmul.f32 1.442695, %v1465_v49  ;;  %v1488_v59 = vsel %vm972_vm3, %v2987_v52, 0.0  ;;  %v1478_v4 = vmul.f32 1.442695, %v1464_v3 }
 0x484   : > { %1489 = vadd.xlane.f32.xlu0 %v1488_v59  ;;  %v1491_v44 = vsel %vm972_vm3, %v2989_v53, 0.0  ;;  %v1676_v5 = vpop.permute.xlu0 %1675  ;;  %v1628_v6 = vpop.permute.xlu1 %1627 }
 0x485   : > { %1492 = vadd.xlane.f32.xlu1 %v1491_v44  ;;  %2992 = vpow2.f32 %v1480_v54  ;;  %v1633_v16 = vsel %vm1535_vm4, %v1628_v6, 0  ;;  %v1681_v17 = vsel %vm1535_vm4, %v1676_v5, 0 }
 0x486   : > { %2994 = vpow2.f32 %v1474_v1 }
 0x487   : > { %2996 = vpow2.f32 %v1478_v4 }
 0x48a   : > { %v3444_v45 = vpop.eup %2990 }
 0x48b   : > { %v1497_v55 = vsel %vm972_vm3, %v3444_v45, 0.0 }
 0x48c   : > { %1498 = vadd.xlane.f32.xlu1 %v1497_v55 }
 0x492   : > { %v3448_v56 = vpop.eup %2992 }
 0x493   : > { %v1503_v57 = vsel %vm972_vm3, %v3448_v56, 0.0  ;;  %v3458_v7 = vpop.eup %2994 }
 0x494   : > { %1504 = vadd.xlane.f32.xlu1 %v1503_v57  ;;  %v3462_v2 = vpop.eup %2996 }
 0x49a   : > { %1771 = vrot.lane.b32.xlu0 %v3313_v58, %s3074_s29  ;;  %v1494_v58 = vsel %vm972_vm3, %v3458_v7, 0.0 }
 0x4a5   : > { %1819 = vrot.lane.b32.xlu1 %v3322_v62, %s3074_s29  ;;  %v1500_v62 = vsel %vm972_vm3, %v3462_v2, 0.0 }
 0x4b5   : > { %v1484_v8 = vpop.xlane.xlu0 %1483  ;;  %v1487_v9 = vpop.xlane.xlu1 %1486 }
 0x4b6   : > { %2998 = vrcp.f32 %v1484_v8 }
 0x4b7   : > { %3000 = vrcp.f32 %v1487_v9 }
 0x4b9   : > { %1495 = vadd.xlane.f32.xlu0 %v1494_v58  ;;  %v1724_v18 = vpop.permute.xlu1 %1723 }
 0x4ba   : > { %v1729_v32 = vsel %vm1535_vm4, %v1724_v18, 0 }
 0x4bd   : > { %1501 = vadd.xlane.f32.xlu0 %v1500_v62 }
 0x4c3   : > { %v2999_v10 = vpop.eup %2998 }
 0x4c4   : > { %v3001_v11 = vpop.eup %3000  ;;  %v1514_v12 = vmul.f32 %v2999_v10, %v2983_v37  ;;  %v2970_v10 = vld [vmem:[%s3218_s1 + $0x8] sm:$0xff]  }
 0x4c5   : > { %v1515_v13 = vmul.f32 %v3001_v11, %v2985_v38 }
 0x4c6   : > { %v1522_v14 = vpack.c.bf16 %v1514_v12, %v1514_v12 }
 0x4c7   : > { %v1523_v15 = vpack.c.bf16 %v1515_v13, %v1515_v13 }
 0x4c8   : > { %2810 = vmatmul.mubr.msk.bf16.vlgmr.msra.gmra.mxu1 %vm972_vm3, %v1522_v14 }
 0x4c9   : > { %2816 = vmatmul.mubr.msk.bf16.vlgmr.msra.gmra.mxu0 %vm972_vm3, %v1523_v15  ;;  %2820 = vmatpush3.bf16.msra.mxu1 %v1633_v16  ;;  %v2971_v16 = vld [vmem:[%s3218_s1] sm:$0xff]   ;;  %s3681_s1 = sld [smem:[#allocation9_spill]] (!%p2678_p5) }
 0x4ca   : > { %2826 = vmatpush3.bf16.msra.mxu0 %v1681_v17  ;;  %2821 = vmatprep.mubr.msk.bf16.mxu1 %vm3069_vm1, %v3068_v31 }
 0x4cb   : > { %2827 = vmatprep.mubr.msk.bf16.mxu0 %vm3069_vm1, %v3068_v31  ;;  %2831 = vmatprep.subr.bf16.mxu1 %v3068_v31 }
 0x4cc   : > { %2837 = vmatprep.subr.bf16.mxu0 %v3068_v31 }
 0x4d3   : > { %1867 = vrot.lane.b32.xlu0 %v3324_v63, %s3074_s29  ;;  %s3075_s29 = smov 8  }
 0x50d   : > { %v1490_v19 = vpop.xlane.xlu0 %1489 }
 0x50e   : > { %3002 = vrcp.f32 %v1490_v19  ;;  %v1493_v20 = vpop.xlane.xlu1 %1492 }
 0x50f   : > { %3004 = vrcp.f32 %v1493_v20 }
 0x511   : > { %v1772_v27 = vpop.permute.xlu0 %1771 }
 0x512   : > { %v1777_v63 = vsel %vm1535_vm4, %v1772_v27, 0 }
 0x515   : > { %v1499_v22 = vpop.xlane.xlu1 %1498 }
 0x516   : > { %3006 = vrcp.f32 %v1499_v22 }
 0x51b   : > { %v3003_v23 = vpop.eup %3002 }
 0x51c   : > { %v3005_v24 = vpop.eup %3004  ;;  %v1516_v25 = vmul.f32 %v3003_v23, %v2987_v52 }
 0x51d   : > { %v1517_v26 = vmul.f32 %v3005_v24, %v2989_v53  ;;  %v1505_v38 = vpop.xlane.xlu1 %1504 }
 0x51e   : > { %v1524_v28 = vpack.c.bf16 %v1516_v25, %v1516_v25  ;;  %3008 = vrcp.f32 %v1505_v38 }
 0x51f   : > { %v1525_v30 = vpack.c.bf16 %v1517_v26, %v1517_v26 }
 0x520   : > { %2822 = vmatmul.mubr.msk.bf16.vlgmr.msra.gmra.mxu1 %vm972_vm3, %v1524_v28 }
 0x521   : > { %2828 = vmatmul.mubr.msk.bf16.vlgmr.msra.gmra.mxu0 %vm972_vm3, %v1525_v30  ;;  %2832 = vmatpush3.bf16.msra.mxu1 %v1729_v32  ;;  %v1820_v46 = vpop.permute.xlu1 %1819 }
 0x522   : > { %2838 = vmatpush3.bf16.msra.mxu0 %v1777_v63  ;;  %2839 = vmatprep.mubr.msk.bf16.mxu0 %vm3069_vm1, %v3068_v31  ;;  %v1825_v49 = vsel %vm1535_vm4, %v1820_v46, 0 }
 0x523   : > { %2849 = vmatprep.subr.bf16.mxu0 %v3068_v31  ;;  %2833 = vmatprep.mubr.msk.bf16.mxu1 %vm3069_vm1, %v3068_v31  ;;  %v3007_v35 = vpop.eup %3006 }
 0x524   : > { %2843 = vmatprep.subr.bf16.mxu1 %v3068_v31  ;;  %v1519_v36 = vmul.f32 %v3007_v35, %v3444_v45 }
 0x526   : > { %v1527_v37 = vpack.c.bf16 %v1519_v36, %v1519_v36 }
 0x529   : > { %2840 = vmatmul.mubr.msk.bf16.vlgmr.msra.gmra.mxu0 %vm972_vm3, %v1527_v37 }
 0x52a   : > { %2851 = vmatprep.mubr.msk.bf16.mxu0 %vm3069_vm1, %v3068_v31 }
 0x52b   : > { %v3009_v40 = vpop.eup %3008 }
 0x52c   : > { %v1521_v51 = vmul.f32 %v3009_v40, %v3448_v56 }
 0x52e   : > { %v1529_v41 = vpack.c.bf16 %v1521_v51, %v1521_v51 }
 0x542   : > { %v1496_v39 = vpop.xlane.xlu0 %1495 }
 0x543   : > { %3010 = vrcp.f32 %v1496_v39 }
 0x546   : > { %v1502_v50 = vpop.xlane.xlu0 %1501 }
 0x547   : > { %3012 = vrcp.f32 %v1502_v50 }
 0x54a   : > { %v1868_v21 = vpop.permute.xlu0 %1867 }
 0x54b   : > { %v1873_v29 = vsel %vm1535_vm4, %v1868_v21, 0 }
 0x54c   : > { %2850 = vmatpush3.bf16.msra.mxu0 %v1873_v29 }
 0x54d   : > { %2863 = vmatprep.subr.bf16.mxu0 %v3068_v31 }
 0x54f   : > { %2852 = vmatmul.mubr.msk.bf16.vlgmr.msra.gmra.mxu0 %vm972_vm3, %v1529_v41 }
 0x550   : > { %v3011_v42 = vpop.eup %3010  ;;  %2867 = vmatprep.mubr.msk.bf16.mxu0 %vm3069_vm1, %v3068_v31 }
 0x551   : > { %v1518_v43 = vmul.f32 %v3011_v42, %v3458_v7  ;;  %v2657_v42 = vld [vmem:[%s3674_s7] ss:$0 sm:$0xff] }
 0x553   : > { %v1526_v47 = vpack.c.bf16 %v1518_v43, %v1518_v43 }
 0x554   : > { %v3013_v48 = vpop.eup %3012 }
 0x555   : > { %2834 = vmatmul.mubr.msk.bf16.vlgmr.msra.gmra.mxu1 %vm972_vm3, %v1526_v47  ;;  %v1520_v52 = vmul.f32 %v3013_v48, %v3462_v2 }
 0x556   : > { %2844 = vmatpush3.bf16.msra.mxu1 %v1825_v49  ;;  %2845 = vmatprep.mubr.msk.bf16.mxu1 %vm3069_vm1, %v3068_v31 }
 0x557   : > { %2855 = vmatprep.subr.bf16.mxu1 %v3068_v31  ;;  %v1528_v53 = vpack.c.bf16 %v1520_v52, %v1520_v52 }
 0x55d   : > { %2846 = vmatmul.mubr.msk.bf16.vlgmr.msra.gmra.mxu1 %vm972_vm3, %v1528_v53 }
 0x55e   : > { %2859 = vmatprep.mubr.msk.bf16.mxu1 %vm3069_vm1, %v3068_v31  ;;  %2856 = vmatpush3.bf16.msra.mxu1 %v2970_v10 }
 0x55f   : > { %2857 = vmatprep.subr.bf16.mxu1 %v3068_v31 }
 0x562   : > { %2858 = vmatpush3.bf16.msra.mxu1 %v2971_v16 }
 0x563   : > { %2871 = vmatprep.subr.bf16.mxu1 %v3068_v31 }
 0x588   : > { %v1573_v54 = vpop.f32.mrf.mxu1 }
 0x589   : > { %v1621_v59 = vpop.f32.mrf.mxu0 }
 0x58a   : > { %v2811_v44 = vpop.f32.mrf.mxu1 }
 0x58b   : > { %v2817_v45 = vpop.f32.mrf.mxu0 }
 0x58c   : > { %v1576_v55 = vpop.f32.mrf.mxu1 }
 0x58d   : > { %v1624_v56 = vpop.f32.mrf.mxu0 }
 0x58e   : > { %v2812_v57 = vpop.f32.mrf.mxu1 }
 0x58f   : > { %v2818_v60 = vpop.f32.mrf.mxu0 }
 0x5e0   : > { %v1669_v61 = vpop.f32.mrf.mxu1 }
 0x5e1   : > { %v1717_v0 = vpop.f32.mrf.mxu0 }
 0x5e2   : > { %v2953_v1 = vpack.i.bf16 %v1717_v0, %v1669_v61  ;;  %v2823_v3 = vpop.f32.mrf.mxu1 }
 0x5e3   : > { %v2829_v4 = vpop.f32.mrf.mxu0 }
 0x5e4   : > { %2954 = vrot.lane.b32.xlu1 %v2953_v1, %s3075_s29  ;;  %v1672_v5 = vpop.f32.mrf.mxu1  ;;  %v2973_v4 = vld [vmem:[%s3235_s30] sm:$0xff]  }
 0x5e5   : > { %v1720_v6 = vpop.f32.mrf.mxu0 }
 0x5e6   : > { %v2824_v7 = vpop.f32.mrf.mxu1 }
 0x5e7   : > { %v2830_v8 = vpop.f32.mrf.mxu0 }
 0x5e9   : > { %v1813_v9 = vpop.f32.mrf.mxu0 }
 0x5eb   : > { %v2841_v58 = vpop.f32.mrf.mxu0 }
 0x5ed   : > { %v1816_v2 = vpop.f32.mrf.mxu0 }
 0x5ef   : > { %v2842_v62 = vpop.f32.mrf.mxu0 }
 0x60f   : > { %v1909_v11 = vpop.f32.mrf.mxu0 }
 0x611   : > { %v2853_v12 = vpop.f32.mrf.mxu0 }
 0x613   : > { %v1912_v13 = vpop.f32.mrf.mxu0 }
 0x615   : > { %v1765_v14 = vpop.f32.mrf.mxu1  ;;  %v2854_v15 = vpop.f32.mrf.mxu0 }
 0x616   : > { %v2958_v17 = vpack.i.bf16 %v1813_v9, %v1765_v14  ;;  %v2662_v14 = vld [vmem:[%s3676_s4] ss:$0 sm:$0xff] }
 0x617   : > { %v2835_v18 = vpop.f32.mrf.mxu1 }
 0x618   : > { %2959 = vrot.lane.b32.xlu0 %v2958_v17, %s3076_s23  ;;  %s3677_s23 = scalar_lea.vmem %s3638_s12, %s3203_s26 }
 0x619   : > { %v1768_v19 = vpop.f32.mrf.mxu1 }
 0x61a   : > { %v2974_v19 = vld [vmem:[%s3245_s21 + $0x38] sm:$0xff]  }
 0x61b   : > { %v2836_v20 = vpop.f32.mrf.mxu1 }
 0x61c   : > { %v2975_v20 = vld [vmem:[%s3245_s21 + $0x30] sm:$0xff]  }
 0x61d   : > { %v1861_v22 = vpop.f32.mrf.mxu1 }
 0x61e   : > { %v2963_v23 = vpack.i.bf16 %v1909_v11, %v1861_v22  ;;  %v2976_v22 = vld [vmem:[%s3245_s21 + $0x28] sm:$0xff]  }
 0x61f   : > { %v2847_v24 = vpop.f32.mrf.mxu1 }
 0x620   : > { %2964 = vrot.lane.b32.xlu1 %v2963_v23, %s3077_s2  ;;  %v2977_v23 = vld [vmem:[%s3245_s21 + $0x20] sm:$0xff]   ;;  %v2978_v24 = vld [vmem:[%s3245_s21 + $0x18] sm:$0xff]  }
 0x621   : > { %v1864_v25 = vpop.f32.mrf.mxu1 }
 0x622   : > { %v2979_v25 = vld [vmem:[%s3245_s21 + $0x10] sm:$0xff]  }
 0x623   : > { %v2848_v26 = vpop.f32.mrf.mxu1 }
 0x624   : > { %v2980_v26 = vld [vmem:[%s3245_s21 + $0x8] sm:$0xff]  }
 0x656   : > { %v2955_v27 = vpop.permute.xlu1 %2954 }
 0x657   : > { %v2957_v30 = vunpack.i.h.bf16 %v2955_v27  ;;  %v2956_v32 = vunpack.i.l.bf16 %v2955_v27  ;;  %v2981_v27 = vld [vmem:[%s3245_s21] sm:$0xff]   ;;  %s3680_s21 = sld [smem:[#allocation15_spill]] (!%p2678_p5) }
 0x659   : > { %v1940_v37 = vsel %vm972_vm3, %v1621_v59, %v2957_v30  ;;  %v1939_v38 = vsel %vm972_vm3, %v1573_v54, %v2956_v32 }
 0x68a   : > { %v2960_v28 = vpop.permute.xlu0 %2959 }
 0x68b   : > { %v2962_v63 = vunpack.i.h.bf16 %v2960_v28  ;;  %v2961_v35 = vunpack.i.l.bf16 %v2960_v28  ;;  %v2663_v28 = vld [vmem:[%s3677_s23] ss:$0 sm:$0xff] }
 0x68d   : > { %v1943_v50 = vsel %vm1941_vm5, %v1940_v37, %v2962_v63  ;;  %v1942_v51 = vsel %vm1941_vm5, %v1939_v38, %v2961_v35 }
 0x692   : > { %v2965_v36 = vpop.permute.xlu1 %2964 }
 0x693   : > { %v2967_v39 = vunpack.i.h.bf16 %v2965_v36  ;;  %v2966_v40 = vunpack.i.l.bf16 %v2965_v36 }
 0x695   : > { %v1946_v21 = vsel %vm1944_vm6, %v1943_v50, %v2967_v39  ;;  %v1945_v29 = vsel %vm1944_vm6, %v1942_v51, %v2966_v40 }
 0x696   : > { %v1947_v41 = vpack.c.bf16 %v1946_v21, %v1945_v29 }
 0x698   : > { %2860 = vmatmul.mubr.msk.bf16.vlgmr.msra.gmra.mxu1 %vm896_vm2, %v1947_v41 }
 0x699   : > { %2887 = vmatprep.mubr.msk.bf16.mxu1 %vm3069_vm1, %v3068_v31  ;;  %2872 = vmatpush3.bf16.msra.mxu1 %v2974_v19  ;;  %v2677_v19 = vld [vmem:[%s814_s19] ss:$0 sm:$0xff] }
 0x69a   : > { %2873 = vmatprep.subr.bf16.mxu1 %v3068_v31 }
 0x69d   : > { %2874 = vmatpush3.bf16.msra.mxu1 %v2975_v20 }
 0x69e   : > { %2875 = vmatprep.subr.bf16.mxu1 %v3068_v31 }
 0x6a1   : > { %2876 = vmatpush3.bf16.msra.mxu1 %v2976_v22 }
 0x6a2   : > { %2877 = vmatprep.subr.bf16.mxu1 %v3068_v31 }
 0x6a5   : > { %2878 = vmatpush3.bf16.msra.mxu1 %v2977_v23 }
 0x6a6   : > { %2879 = vmatprep.subr.bf16.mxu1 %v3068_v31 }
 0x6a9   : > { %2880 = vmatpush3.bf16.msra.mxu1 %v2978_v24 }
 0x6aa   : > { %2881 = vmatprep.subr.bf16.mxu1 %v3068_v31 }
 0x6ad   : > { %2882 = vmatpush3.bf16.msra.mxu1 %v2979_v25 }
 0x6ae   : > { %2883 = vmatprep.subr.bf16.mxu1 %v3068_v31 }
 0x6b1   : > { %2884 = vmatpush3.bf16.msra.mxu1 %v2980_v26 }
 0x6b2   : > { %2885 = vmatprep.subr.bf16.mxu1 %v3068_v31 }
 0x6b5   : > { %2886 = vmatpush3.bf16.msra.mxu1 %v2981_v27 }
 0x758   : > { %v2008_v43 = vpop.f32.mrf.mxu1 }
 0x759   : > { %v2009_v46 = vadd.f32 %v2657_v42, %v2008_v43 }
 0x75a   : > { %v2861_v47 = vpop.f32.mrf.mxu1 }
 0x75b   : > { %v2015_v48 = vadd.f32 %v2009_v46, %v3284_v33 }
 0x75c   : > { %v2011_v49 = vpop.f32.mrf.mxu1 }
 0x75d   : > { %v2012_v52 = vadd.f32 %v2657_v42, %v2011_v49  ;;  %v2019_v53 = vsel %vm896_vm2, %v2015_v48, 0.0 }
 0x75e   : > { %2020 = vadd.xlane.f32.xlu0 %v2019_v53  ;;  %v2862_v54 = vpop.f32.mrf.mxu1 }
 0x75f   : > { %v2016_v59 = vadd.f32 %v2012_v52, %v3286_v34  ;;  %v2972_v34 = vld [vmem:[%s3235_s30 + $0x8] sm:$0xff]   ;;  %s3675_s30 = scalar_lea.vmem %s3635_s9, %s3203_s26 }
 0x760   : > { %2864 = vmatpush3.bf16.msra.mxu0 %v2972_v34  ;;  %v2661_v10 = vld [vmem:[%s3675_s30] ss:$0 sm:$0xff] }
 0x761   : > { %v2022_v44 = vsel %vm896_vm2, %v2016_v59, 0.0  ;;  %2865 = vmatprep.subr.bf16.mxu0 %v3068_v31 }
 0x762   : > { %2023 = vadd.xlane.f32.xlu1 %v2022_v44  ;;  %v2667_v44 = vld [vmem:[%s808_s3] ss:$0 sm:$0xff] }
 0x764   : > { %2866 = vmatpush3.bf16.msra.mxu0 %v2973_v4 }
 0x7e7   : > { %v2021_v45 = vpop.xlane.xlu0 %2020 }
 0x7e8   : > { %v2026_v55 = vmul.f32 0.03125, %v2021_v45 }
 0x7ea   : > { %v2028_v56 = vsub.f32 %v2015_v48, %v2026_v55 }
 0x7eb   : > { %v2024_v57 = vpop.xlane.xlu1 %2023 }
 0x7ec   : > { %v2027_v60 = vmul.f32 0.03125, %v2024_v57  ;;  %v2030_v61 = vmul.f32 %v2028_v56, %v2028_v56 }
 0x7ee   : > { %v2029_v33 = vsub.f32 %v2016_v59, %v2027_v60  ;;  %v2032_v0 = vsel %vm896_vm2, %v2030_v61, 0.0 }
 0x7ef   : > { %2033 = vadd.xlane.f32.xlu0 %v2032_v0 }
 0x7f0   : > { %v2031_v1 = vmul.f32 %v2029_v33, %v2029_v33 }
 0x7f2   : > { %v2035_v3 = vsel %vm896_vm2, %v2031_v1, 0.0 }
 0x7f3   : > { %2036 = vadd.xlane.f32.xlu0 %v2035_v3 }
 0x878   : > { %v2034_v5 = vpop.xlane.xlu0 %2033 }
 0x879   : > { %v2038_v6 = vmul.f32 0.03125, %v2034_v5 }
 0x87b   : > { %v2040_v7 = vadd.f32 1e-12, %v2038_v6 }
 0x87c   : > { %v2037_v8 = vpop.xlane.xlu0 %2036 }
 0x87d   : > { %3014 = vrsqrt.f32 %v2040_v7  ;;  %v2039_v9 = vmul.f32 0.03125, %v2037_v8 }
 0x87f   : > { %v2041_v58 = vadd.f32 1e-12, %v2039_v9 }
 0x881   : > { %3016 = vrsqrt.f32 %v2041_v58 }
 0x88a   : > { %v3015_v2 = vpop.eup %3014 }
 0x88b   : > { %v2044_v62 = vmul.f32 %v3015_v2, %v2028_v56 }
 0x88d   : > { %v2052_v13 = vmul.f32 %v2661_v10, %v2044_v62 }
 0x88e   : > { %v3017_v11 = vpop.eup %3016 }
 0x88f   : > { %v2045_v12 = vmul.f32 %v3017_v11, %v2029_v33  ;;  %v2060_v16 = vadd.f32 %v2662_v14, %v2052_v13 }
 0x891   : > { %v2053_v15 = vmul.f32 %v2661_v10, %v2045_v12 }
 0x893   : > { %v3541_v17 = vadd.f32 %v2662_v14, %v2053_v15 }
 0x895   : > { %v2062_v18 = vpack.c.bf16 %v3541_v17, %v2060_v16 }
 0x897   : > { %2868 = vmatmul.mubr.msk.bf16.vlgmr.msra.gmra.mxu0 %vm896_vm2, %v2062_v18 }
 0x957   : > { %v2123_v30 = vpop.f32.mrf.mxu0 }
 0x958   : > { %v2124_v32 = vadd.f32 %v2663_v28, %v2123_v30 }
 0x959   : > { %v2869_v63 = vpop.f32.mrf.mxu0 }
 0x95a   : > { %v2132_v35 = vmul.f32 0.044715, %v2124_v32  ;;  %v2130_v48 = vmul.f32 0.5, %v2124_v32 }
 0x95b   : > { %v2126_v36 = vpop.f32.mrf.mxu0 }
 0x95c   : > { %v2134_v37 = vmul.f32 %v2132_v35, %v2124_v32  ;;  %v2127_v38 = vadd.f32 %v2663_v28, %v2126_v36 }
 0x95d   : > { %v2870_v39 = vpop.f32.mrf.mxu0 }
 0x95e   : > { %v2136_v40 = vmul.f32 %v2134_v37, %v2124_v32  ;;  %v2133_v50 = vmul.f32 0.044715, %v2127_v38  ;;  %v2131_v49 = vmul.f32 0.5, %v2127_v38 }
 0x960   : > { %v2138_v51 = vadd.f32 %v2136_v40, %v2124_v32  ;;  %v2135_v21 = vmul.f32 %v2133_v50, %v2127_v38 }
 0x962   : > { %v2140_v29 = vmul.f32 0.7978846, %v2138_v51  ;;  %v2137_v31 = vmul.f32 %v2135_v21, %v2127_v38 }
 0x964   : > { %3018 = vtanh.f32 %v2140_v29  ;;  %v2139_v41 = vadd.f32 %v2137_v31, %v2127_v38 }
 0x966   : > { %v2141_v42 = vmul.f32 0.7978846, %v2139_v41 }
 0x968   : > { %3020 = vtanh.f32 %v2141_v42 }
 0x971   : > { %v3019_v43 = vpop.eup %3018 }
 0x972   : > { %v2144_v46 = vadd.f32 1.0, %v3019_v43 }
 0x974   : > { %v2146_v53 = vmul.f32 %v2144_v46, %v2130_v48 }
 0x975   : > { %v3021_v47 = vpop.eup %3020 }
 0x976   : > { %v2145_v52 = vadd.f32 1.0, %v3021_v47 }
 0x978   : > { %v2147_v54 = vmul.f32 %v2145_v52, %v2131_v49 }
 0x97a   : > { %v2148_v59 = vpack.c.bf16 %v2147_v54, %v2146_v53 }
 0x97c   : > { %2888 = vmatmul.mubr.bf16.vlgmr.msra.gmra.mxu1 %v2148_v59 }
 0xa3c   : > { %v2254_v45 = vpop.f32.mrf.mxu1 }
 0xa3d   : > { %v2255_v55 = vadd.f32 %v2667_v44, %v2254_v45 }
 0xa3e   : > { %v2889_v56 = vpop.f32.mrf.mxu1 }
 0xa3f   : > { %v2261_v57 = vadd.f32 %v2255_v55, %v2060_v16 }
 0xa40   : > { %v2257_v60 = vpop.f32.mrf.mxu1 }
 0xa41   : > { %v2258_v61 = vadd.f32 %v2667_v44, %v2257_v60  ;;  %v2265_v33 = vsel %vm896_vm2, %v2261_v57, 0.0 }
 0xa42   : > { %2266 = vadd.xlane.f32.xlu1 %v2265_v33  ;;  %v2890_v0 = vpop.f32.mrf.mxu1 }
 0xa43   : > { %v2262_v1 = vadd.f32 %v2258_v61, %v3541_v17  ;;  %v2676_v17 = vld [vmem:[%s811_s0] ss:$0 sm:$0xff]  ;;  %s3682_s0 = sld [smem:[#allocation17_spill]] (!%p2678_p5) }
 0xa45   : > { %v2268_v3 = vsel %vm896_vm2, %v2262_v1, 0.0 }
 0xa46   : > { %2269 = vadd.xlane.f32.xlu0 %v2268_v3 }
 0xacb   : > { %v2267_v34 = vpop.xlane.xlu1 %2266 }
 0xacc   : > { %v2271_v4 = vmul.f32 0.03125, %v2267_v34 }
 0xace   : > { %v2273_v5 = vsub.f32 %v2261_v57, %v2271_v4 }
 0xacf   : > { %v2270_v6 = vpop.xlane.xlu0 %2269 }
 0xad0   : > { %v2272_v7 = vmul.f32 0.03125, %v2270_v6  ;;  %v2275_v8 = vmul.f32 %v2273_v5, %v2273_v5 }
 0xad2   : > { %v2274_v9 = vsub.f32 %v2262_v1, %v2272_v7  ;;  %v2277_v58 = vsel %vm896_vm2, %v2275_v8, 0.0 }
 0xad3   : > { %2278 = vadd.xlane.f32.xlu1 %v2277_v58 }
 0xad4   : > { %v2276_v2 = vmul.f32 %v2274_v9, %v2274_v9 }
 0xad6   : > { %v2280_v62 = vsel %vm896_vm2, %v2276_v2, 0.0 }
 0xad7   : > { %2281 = vadd.xlane.f32.xlu0 %v2280_v62 }
 0xb5c   : > { %v2279_v10 = vpop.xlane.xlu1 %2278 }
 0xb5d   : > { %v2283_v11 = vmul.f32 0.03125, %v2279_v10 }
 0xb5f   : > { %v2285_v12 = vadd.f32 1e-12, %v2283_v11 }
 0xb60   : > { %v2282_v13 = vpop.xlane.xlu0 %2281 }
 0xb61   : > { %3022 = vrsqrt.f32 %v2285_v12  ;;  %v2284_v14 = vmul.f32 0.03125, %v2282_v13 }
 0xb63   : > { %v2286_v15 = vadd.f32 1e-12, %v2284_v14 }
 0xb65   : > { %3024 = vrsqrt.f32 %v2286_v15 }
 0xb6e   : > { %v3023_v16 = vpop.eup %3022 }
 0xb6f   : > { %v2289_v18 = vmul.f32 %v3023_v16, %v2273_v5 }
 0xb71   : > { %v2297_v20 = vmul.f32 %v2676_v17, %v2289_v18 }
 0xb72   : > { %v3025_v22 = vpop.eup %3024 }
 0xb73   : > { %v2305_v23 = vadd.f32 %v2677_v19, %v2297_v20  ;;  %v2290_v24 = vmul.f32 %v3025_v22, %v2274_v9 }
 0xb75   : > { %2307 = vst.msk [vmem:[#allocation2] sm:$0xff] %vm896_vm2, %v2305_v23  ;;  %v2298_v25 = vmul.f32 %v2676_v17, %v2290_v24  ;;  %2312 = sbr.rel (%p2678_p5) target bundleno = 3359 (0xd1f), region = 112 }
 0xb77   : > { %v2306_v26 = vadd.f32 %v2677_v19, %v2298_v25 }
 0xb79   : > { %2308 = vst.msk [vmem:[#allocation2 + $0x8] sm:$0xff] %vm896_vm2, %v2306_v26 }
 0xb7a   : > { %v3026_v27 = vld [vmem:[%s3678_s20 + $0x8] sm:$0xff]   ;;  %v2313_v28 = vpack.c.bf16 %v2305_v23, %v2305_v23  ;;  %v2314_v30 = vpack.c.bf16 %v2306_v26, %v2306_v26  ;;  %v3078_v32 = vmov 0.0   ;;  %v3027_v63 = vld [vmem:[%s3678_s20] sm:$0xff]   ;;  %vm3079_vm7 = vmmov 0  }
 0xb7b   : > { %2891 = vmatprep.subr.bf16.mxu0 %v3078_v32  ;;  %2899 = vmatprep.subr.bf16.mxu1 %v3078_v32  ;;  %vm2331_vm8 = vcmask 1041409   ;;  %v3028_v40 = vld [vmem:[%s3679_s5 + $0x8] sm:$0xff]   ;;  %v3029_v50 = vld [vmem:[%s3679_s5] sm:$0xff]  }
 0xb7c   : > { %2892 = vmatpush3.bf16.msra.mxu0 %v3026_v27  ;;  %2895 = vmatprep.mubr.msk.bf16.mxu0 %vm3079_vm7, %v3078_v32  ;;  %v2328_v35 = vunpack.c.l.b16 %v2313_v28  ;;  %v2329_v36 = vunpack.c.l.b16 %v2314_v30  ;;  %v2679_v51 = vld [vmem:[%s3680_s21] ss:$0 sm:$0xff] }
 0xb7d   : > { %2893 = vmatprep.subr.bf16.mxu0 %v3078_v32  ;;  %2903 = vmatprep.mubr.msk.bf16.mxu1 %vm3079_vm7, %v3078_v32  ;;  %v2390_v43 = vld [vmem:[%s3681_s1] sm:$0x3] }
 0xb7e   : > { %v2330_v37 = vrot.slane %v2329_v36, 7  ;;  %2900 = vmatpush3.bf16.msra.mxu1 %v3028_v40  ;;  %v2683_v49 = vld [vmem:[%s3682_s0] ss:$0 sm:$0xff] }
 0xb7f   : > { %2901 = vmatprep.subr.bf16.mxu1 %v3078_v32 }
 0xb80   : > { %2894 = vmatpush3.bf16.msra.mxu0 %v3027_v63  ;;  %v2332_v38 = vsel %vm2331_vm8, %v2330_v37, %v2328_v35 }
 0xb81   : > { %v2333_v39 = vpack.c.b16 %v2332_v38, %v2332_v38 }
 0xb82   : > { %2902 = vmatpush3.bf16.msra.mxu1 %v3029_v50 }
 0xb83   : > { %2896 = vmatmul.mubr.msk.bf16.vlgmr.msra.gmra.mxu0 %vm896_vm2, %v2333_v39 }
 0xc43   : > { %v2383_v21 = vpop.f32.mrf.mxu0 }
 0xc44   : > { %v2384_v29 = vadd.f32 %v2679_v51, %v2383_v21 }
 0xc45   : > { %v2897_v31 = vpop.f32.mrf.mxu0 }
 0xc46   : > { %3030 = vtanh.f32 %v2384_v29 }
 0xc47   : > { %v2386_v41 = vpop.f32.mrf.mxu0 }
 0xc49   : > { %v2898_v42 = vpop.f32.mrf.mxu0 }
 0xc53   : > { %v3031_v46 = vpop.eup %3030 }
 0xc54   : > { %v2391_v47 = vmul.f32 %v3031_v46, %v2390_v43 }
 0xc56   : > { %v2392_v48 = vpack.c.bf16 %v2391_v47, %v2391_v47 }
 0xc58   : > { %2904 = vmatmul.mubr.msk.bf16.vlgmr.msra.gmra.mxu1 %vm896_vm2, %v2392_v48 }
 0xd18   : > { %v2453_v52 = vpop.f32.mrf.mxu1 }
 0xd19   : > { %v2454_v53 = vadd.f32 %v2683_v49, %v2453_v52 }
 0xd1a   : > { %v2905_v54 = vpop.f32.mrf.mxu1 }
 0xd1b   : > { %2459 = vst [vmem:[#allocation3] sm:$0x3] %v2454_v53 }
 0xd1c   : > { %v2456_v59 = vpop.f32.mrf.mxu1 }
 0xd1e   : > { %v2906_v44 = vpop.f32.mrf.mxu1 }
 0xd1f PF: > { %p2911_p6 = scmp.eq.s32.totalorder %s3197_s25, 1  ;;  %s3080_s18 = smov [#allocation3]  }
 0xd20   : > { %s2467_s19 = sshll.u32 %s3080_s18, 4  ;;  %s2468_s19 = int_to_ptr.vmem [resolvable:$true] %s2467_s19 }
 0xd21   : > { %s3032_s26 = scalar_lea.vmem %s2468_s19, 32  ;;  %p3039_p10 = scmp.lt.s32.totalorder %s2468_s19, %s2468_s19 }
 0xd22   : > { %p3033_p7 = scmp.ne.s32.totalorder %s2468_s19, %s3032_s26  ;;  %p3040_p11 = scmp.lt.s32.totalorder %s3032_s26, %s3032_s26 }
 0xd24   : > { %p3034_p8 = pnand %p3033_p7, %p2911_p6  ;;  %p3041_p12 = por %p3040_p11, %p3039_p10 }
 0xd26   : > { %p3035_p9 = pneg %p3034_p8 }
 0xd28   : > { %p3042_p13 = pnand %p3041_p12, %p3035_p9 }
 0xd2a   : > { %3045 = shalt.err (!%p3042_p13)
}
 0xd2b   : > { %s3683_s4 = sld [smem:[#allocation18_spill]] }
 0xd31   : > { %2908 = dma.vmem_to_hbm [thread:$0]  (%p2911_p6), %s2468_s19, 32, %s3683_s4, [#allocation4]  }
 0xd32   : > { %3061 = dma.done.wait (%p2911_p6), [#allocation4], 32  }
 0xd33   : > { %3063 = vsyncadd (%p2911_p6), [#allocation4], 4294967264 }
 0xd34 PF: > { %s3684_s22 = sld [smem:[#allocation6_spill]] }
 0xd3a   : > { %s32_s2 = sadd.s32 1, %s3684_s22  }
 0xd3b   : > { %p29_p0 = scmp.ge.s32.totalorder %s32_s2, 4  }
 0xd3d   :  { %31 = sbr.rel (!%p29_p0) target bundleno = 14 (0xe), region = 172 }
 0xd42   :  { %2480 = vsyncpa [#allocation4], 1 }
 0xd43   :  { %2482 = vsyncpa [#allocation4 + $0x1], 1 }

</bundles_post_ra>
